<compile_context>
chip_gen: v5e
topology: v5e:2x2
jax: 0.10.0
libtpu: 0.0.40
codegen_flags: <defaults>
</compile_context>

<pallas_src>
import numpy as np
import jax
import jax.numpy as jnp
from jax.experimental import pallas as pl
from jax.experimental.pallas import tpu as pltpu

# Static model dimensions (fc1 = 64*5*2  =>  input spatial size H=20, W=2).
H0, W = 20, 2              # input spatial size
C1, C2, C3 = 16, 32, 64    # conv channel widths
H1, H2 = H0 // 2, H0 // 4  # heights after the two (2,1) max-pools
FC1, NOUT = 128, 6
NOUT_PAD = 128             # logits padded to a lane-dense width for the HBM store
TB = 8                     # samples per grid step (multiple of 8 => aligned shifts)


# ----------------------------------------------------------------------------
# Fused Pallas kernel: one batch tile of TB samples per grid step.
# Activation rows are packed r = h*TB + b (h outer, sample inner); lanes are
# (w, channel) with w outer.  All intermediates stay in VMEM scratch slabs.
# ----------------------------------------------------------------------------
def _fused_kernel(x_ref,
                  w1m_ref, w1c_ref, w1p_ref, b1_ref,
                  w2m_ref, w2c_ref, w2p_ref, b2_ref,
                  w3m_ref, w3c_ref, w3p_ref, b3_ref,
                  wf1_ref, bf1_ref, wf2_ref, bf2_ref,
                  o_ref,
                  s1, s2, q1, s3, q2):

    def conv3x3_relu(x_val, wm_ref, wc_ref, wp_ref, b_ref, acc, h):
        # out[h*TB+b] = relu(x[(h-1)*TB+b] @ Wm + x[h*TB+b] @ Wc
        #                    + x[(h+1)*TB+b] @ Wp + bias), zero-padded in h.
        # Width (W=2) zero-padding is already folded into the packed weights.
        # Shifts are by TB=8 rows => vreg-aligned slices, no cross-sample mix.
        R = h * TB
        yc = jnp.dot(x_val, wc_ref[...], preferred_element_type=jnp.float32)
        ym = jnp.dot(x_val, wm_ref[...], preferred_element_type=jnp.float32)
        yp = jnp.dot(x_val, wp_ref[...], preferred_element_type=jnp.float32)
        acc[...] = yc + b_ref[...]
        acc[TB:R, :] = acc[TB:R, :] + ym[:R - TB, :]
        # Fuse the ReLU into the last update (last TB rows get no yp term).
        acc[:R - TB, :] = jnp.maximum(acc[:R - TB, :] + yp[TB:R, :], 0.0)
        acc[R - TB:R, :] = jnp.maximum(acc[R - TB:R, :], 0.0)

    def maxpool2x1(src, dst, h):
        # dst[k*TB+b] = max(src[2k*TB+b], src[(2k+1)*TB+b]); h is tiny, unroll.
        for k in range(h // 2):
            dst[k * TB:(k + 1) * TB, :] = jnp.maximum(
                src[(2 * k) * TB:(2 * k + 1) * TB, :],
                src[(2 * k + 1) * TB:(2 * k + 2) * TB, :])

    x = x_ref[0]                                                      # (H0*TB, 2)
    conv3x3_relu(x, w1m_ref, w1c_ref, w1p_ref, b1_ref, s1, H0)        # (160, 32)
    conv3x3_relu(s1[...], w2m_ref, w2c_ref, w2p_ref, b2_ref, s2, H0)  # (160, 64)
    maxpool2x1(s2, q1, H0)                                            # (80,  64)
    conv3x3_relu(q1[...], w3m_ref, w3c_ref, w3p_ref, b3_ref, s3, H1)  # (80, 128)
    maxpool2x1(s3, q2, H1)                                            # (40, 128)

    # fc1: out[b] = relu(sum_h q2[h*TB+b, :] @ wf1[h] + bias)  ->  (TB, 128)
    acc = jnp.dot(q2[0:TB, :], wf1_ref[0], preferred_element_type=jnp.float32)
    for h in range(1, H2):
        acc = acc + jnp.dot(q2[h * TB:(h + 1) * TB, :], wf1_ref[h],
                            preferred_element_type=jnp.float32)
    h1 = jnp.maximum(acc + bf1_ref[...], 0.0)
    # fc2 (padded to 128 output lanes) -> lane-dense (TB, 128) store.
    o_ref[...] = jnp.dot(h1, wf2_ref[...],
                         preferred_element_type=jnp.float32) + bf2_ref[...]


# ----------------------------------------------------------------------------
# One-time weight re-layout (done OUTSIDE the forward, once)
# ----------------------------------------------------------------------------
def prepare_params(p):
    """Pack conv weights into per-vertical-tap matrices; pre-permute fc1/fc2.

    Conv w (Cout, Cin, 3, 3) -> three matrices W_ky of shape (W*Cin, W*Cout):
        W_ky[wi*Cin + ci, wo*Cout + co] = w[co, ci, ky, wi - wo + 1]
    (for W=2 every (wi, wo) pair maps to exactly one valid horizontal tap);
    horizontal zero-padding is implicit.  Lanes are packed (w outer, ch inner).
    """
    def conv_mats(w):
        cout, cin = int(w.shape[0]), int(w.shape[1])
        mats = []
        for ky in range(3):
            m = jnp.zeros((W * cin, W * cout), jnp.float32)
            for wi in range(W):
                for wo in range(W):
                    kx = wi - wo + 1
                    m = m.at[wi * cin:(wi + 1) * cin,
                             wo * cout:(wo + 1) * cout].set(w[:, :, ky, kx].T)
            mats.append(m)
        return mats  # [ky=0: uses row h-1, ky=1: row h, ky=2: row h+1]

    w1m, w1c, w1p = conv_mats(p["w1"])
    w2m, w2c, w2p = conv_mats(p["w2"])
    w3m, w3c, w3p = conv_mats(p["w3"])

    # Torch flattens (N, C3, H2, W) as f = c*H2*W + h*W + w.  Pooled activation
    # layout is rows = h*TB + b, lanes = w*C3 + c, so build
    #   wf1[h, w*C3 + c, o] = fc1_w[o, c*H2*W + h*W + w].
    wf1 = jnp.transpose(p["fc1_w"].reshape(FC1, C3, H2, W), (2, 3, 1, 0))
    wf1 = wf1.reshape(H2, W * C3, FC1)

    # fc2: transpose and zero-pad the output dim to a lane-dense 128.
    wf2 = jnp.zeros((FC1, NOUT_PAD), jnp.float32).at[:, :NOUT].set(p["fc2_w"].T)
    bf2 = jnp.zeros((1, NOUT_PAD), jnp.float32).at[0, :NOUT].set(p["fc2_b"])

    return dict(
        w1m=w1m, w1c=w1c, w1p=w1p, b1=jnp.tile(p["b1"], W)[None, :],
        w2m=w2m, w2c=w2c, w2p=w2p, b2=jnp.tile(p["b2"], W)[None, :],
        w3m=w3m, w3c=w3c, w3p=w3p, b3=jnp.tile(p["b3"], W)[None, :],
        wf1=wf1, bf1=p["fc1_b"][None, :],
        wf2=wf2, bf2=bf2,
    )


# ----------------------------------------------------------------------------
# Forward pass: a single pallas_call over batch tiles of TB samples
# ----------------------------------------------------------------------------
@jax.jit
def cnn_forward(x_nchw, fp):
    """x_nchw: (N, 1, 20, 2) f32;  fp = prepare_params(raw_params)."""
    assert x_nchw.shape[1:] == (1, H0, W)
    N = x_nchw.shape[0]
    n_pad = ((N + TB - 1) // TB) * TB
    nt = n_pad // TB

    x3 = x_nchw.reshape(N, H0, W)
    if n_pad != N:
        x3 = jnp.concatenate(
            [x3, jnp.zeros((n_pad - N, H0, W), x3.dtype)], axis=0)
    # Pack each batch tile h-outer / sample-inner: (nt, H0*TB, W).
    xt = x3.reshape(nt, TB, H0, W).transpose(0, 2, 1, 3).reshape(nt, H0 * TB, W)

    weights = [fp["w1m"], fp["w1c"], fp["w1p"], fp["b1"],
               fp["w2m"], fp["w2c"], fp["w2p"], fp["b2"],
               fp["w3m"], fp["w3c"], fp["w3p"], fp["b3"],
               fp["wf1"], fp["bf1"], fp["wf2"], fp["bf2"]]

    def _resident(arr):
        # Whole array, same block every grid step -> stays VMEM-resident.
        if arr.ndim == 2:
            return pl.BlockSpec(arr.shape, lambda n: (0, 0))
        return pl.BlockSpec(arr.shape, lambda n: (0, 0, 0))

    in_specs = [pl.BlockSpec((1, H0 * TB, W), lambda n: (n, 0, 0))]
    in_specs += [_resident(a) for a in weights]

    out = pl.pallas_call(
        _fused_kernel,
        out_shape=jax.ShapeDtypeStruct((n_pad, NOUT_PAD), jnp.float32),
        grid=(nt,),
        in_specs=in_specs,
        out_specs=pl.BlockSpec((TB, NOUT_PAD), lambda n: (n, 0)),
        scratch_shapes=[
            pltpu.VMEM((H0 * TB, W * C1), jnp.float32),   # conv1 output slab
            pltpu.VMEM((H0 * TB, W * C2), jnp.float32),   # conv2 output slab
            pltpu.VMEM((H1 * TB, W * C2), jnp.float32),   # pool1 output slab
            pltpu.VMEM((H1 * TB, W * C3), jnp.float32),   # conv3 output slab
            pltpu.VMEM((H2 * TB, W * C3), jnp.float32),   # pool2 output slab
        ],
        compiler_params=pltpu.CompilerParams(
            dimension_semantics=("parallel",)),           # batch tiles across TCs
    )(xt, *weights)
    return out[:N, :NOUT]


# ----------------------------------------------------------------------------
# Pure-JAX reference (mirrors the PyTorch forward) for verification
# ----------------------------------------------------------------------------
def reference_forward(x, p):
    hp = jax.lax.Precision.HIGHEST

    def conv(h, w, b):
        y = jax.lax.conv_general_dilated(
            h, w, window_strides=(1, 1), padding=((1, 1), (1, 1)),
            dimension_numbers=("NCHW", "OIHW", "NCHW"), precision=hp)
        return y + b[None, :, None, None]

    def pool(h):
        return jax.lax.reduce_window(h, -jnp.inf, jax.lax.max,
                                     (1, 1, 2, 1), (1, 1, 2, 1), "VALID")

    h = jax.nn.relu(conv(x, p["w1"], p["b1"]))
    h = pool(jax.nn.relu(conv(h, p["w2"], p["b2"])))
    h = pool(jax.nn.relu(conv(h, p["w3"], p["b3"])))
    h = h.reshape(h.shape[0], -1)
    h = jax.nn.relu(jnp.dot(h, p["fc1_w"].T, precision=hp) + p["fc1_b"])
    return jnp.dot(h, p["fc2_w"].T, precision=hp) + p["fc2_b"]


# ----------------------------------------------------------------------------
# Deterministic parameter init (PyTorch-like uniform(-1/sqrt(fan_in), ...))
# ----------------------------------------------------------------------------
def init_params(key):
    def conv_init(k, cout, cin):
        k1, k2 = jax.random.split(k)
        bound = 1.0 / np.sqrt(cin * 9)
        w = jax.random.uniform(k1, (cout, cin, 3, 3), jnp.float32, -bound, bound)
        b = jax.random.uniform(k2, (cout,), jnp.float32, -bound, bound)
        return w, b

    def linear_init(k, dout, din):
        k1, k2 = jax.random.split(k)
        bound = 1.0 / np.sqrt(din)
        w = jax.random.uniform(k1, (dout, din), jnp.float32, -bound, bound)
        b = jax.random.uniform(k2, (dout,), jnp.float32, -bound, bound)
        return w, b

    ks = jax.random.split(key, 5)
    w1, b1 = conv_init(ks[0], C1, 1)
    w2, b2 = conv_init(ks[1], C2, C1)
    w3, b3 = conv_init(ks[2], C3, C2)
    fw1, fb1 = linear_init(ks[3], FC1, C3 * H2 * W)
    fw2, fb2 = linear_init(ks[4], NOUT, FC1)
    return dict(w1=w1, b1=b1, w2=w2, b2=b2, w3=w3, b3=b3,
                fc1_w=fw1, fc1_b=fb1, fc2_w=fw2, fc2_b=fb2)


if __name__ == "__main__":
    key = jax.random.PRNGKey(0)
    kp, kx = jax.random.split(key)
    params = init_params(kp)

    # fc1 expects 64*5*2 = 640 features after two (2,1) pools -> input (N,1,20,2)
    x = jax.random.normal(kx, (2, 1, H0, W), dtype=jnp.float32)

    fused_params = prepare_params(params)          # one-time weight re-layout
    out = jax.block_until_ready(cnn_forward(x, fused_params))
    assert out.shape == (2, NOUT) and out.dtype == jnp.float32

    ref = jax.block_until_ready(reference_forward(x, params))
    np.testing.assert_allclose(np.asarray(out), np.asarray(ref),
                               rtol=2e-3, atol=2e-3)

    print("KERNEL_OK")
</pallas_src>

<mosaic_0001>
module attributes {stable_mosaic.version = 11 : i64} {
  func.func @_fused_kernel(%arg0: i32, %arg1: memref<1x160x2xf32, #tpu.memory_space<vmem>>, %arg2: memref<2x32xf32, #tpu.memory_space<vmem>>, %arg3: memref<2x32xf32, #tpu.memory_space<vmem>>, %arg4: memref<2x32xf32, #tpu.memory_space<vmem>>, %arg5: memref<1x32xf32, #tpu.memory_space<vmem>>, %arg6: memref<32x64xf32, #tpu.memory_space<vmem>>, %arg7: memref<32x64xf32, #tpu.memory_space<vmem>>, %arg8: memref<32x64xf32, #tpu.memory_space<vmem>>, %arg9: memref<1x64xf32, #tpu.memory_space<vmem>>, %arg10: memref<64x128xf32, #tpu.memory_space<vmem>>, %arg11: memref<64x128xf32, #tpu.memory_space<vmem>>, %arg12: memref<64x128xf32, #tpu.memory_space<vmem>>, %arg13: memref<1x128xf32, #tpu.memory_space<vmem>>, %arg14: memref<5x128x128xf32, #tpu.memory_space<vmem>>, %arg15: memref<1x128xf32, #tpu.memory_space<vmem>>, %arg16: memref<128x128xf32, #tpu.memory_space<vmem>>, %arg17: memref<1x128xf32, #tpu.memory_space<vmem>>, %arg18: memref<8x128xf32, #tpu.memory_space<vmem>>, %arg19: memref<160x32xf32, #tpu.memory_space<vmem>>, %arg20: memref<160x64xf32, #tpu.memory_space<vmem>>, %arg21: memref<80x64xf32, #tpu.memory_space<vmem>>, %arg22: memref<80x128xf32, #tpu.memory_space<vmem>>, %arg23: memref<40x128xf32, #tpu.memory_space<vmem>>) attributes {dimension_semantics = [#tpu.dimension_semantics<parallel>], iteration_bounds = array<i64: 1>, scalar_prefetch = 0 : i64, scratch_operands = 5 : i64, tpu.core_type = #tpu.core_type<tc>, window_params = [{transform_indices = @transform_0, window_bounds = array<i64: 1, 160, 2>}, {pipeline_mode = #tpu.pipeline_mode<synchronous>, transform_indices = @transform_1, window_bounds = array<i64: 2, 32>}, {pipeline_mode = #tpu.pipeline_mode<synchronous>, transform_indices = @transform_2, window_bounds = array<i64: 2, 32>}, {pipeline_mode = #tpu.pipeline_mode<synchronous>, transform_indices = @transform_3, window_bounds = array<i64: 2, 32>}, {pipeline_mode = #tpu.pipeline_mode<synchronous>, transform_indices = @transform_4, window_bounds = array<i64: 1, 32>}, {pipeline_mode = #tpu.pipeline_mode<synchronous>, transform_indices = @transform_5, window_bounds = array<i64: 32, 64>}, {pipeline_mode = #tpu.pipeline_mode<synchronous>, transform_indices = @transform_6, window_bounds = array<i64: 32, 64>}, {pipeline_mode = #tpu.pipeline_mode<synchronous>, transform_indices = @transform_7, window_bounds = array<i64: 32, 64>}, {pipeline_mode = #tpu.pipeline_mode<synchronous>, transform_indices = @transform_8, window_bounds = array<i64: 1, 64>}, {pipeline_mode = #tpu.pipeline_mode<synchronous>, transform_indices = @transform_9, window_bounds = array<i64: 64, 128>}, {pipeline_mode = #tpu.pipeline_mode<synchronous>, transform_indices = @transform_10, window_bounds = array<i64: 64, 128>}, {pipeline_mode = #tpu.pipeline_mode<synchronous>, transform_indices = @transform_11, window_bounds = array<i64: 64, 128>}, {pipeline_mode = #tpu.pipeline_mode<synchronous>, transform_indices = @transform_12, window_bounds = array<i64: 1, 128>}, {pipeline_mode = #tpu.pipeline_mode<synchronous>, transform_indices = @transform_13, window_bounds = array<i64: 5, 128, 128>}, {pipeline_mode = #tpu.pipeline_mode<synchronous>, transform_indices = @transform_14, window_bounds = array<i64: 1, 128>}, {pipeline_mode = #tpu.pipeline_mode<synchronous>, transform_indices = @transform_15, window_bounds = array<i64: 128, 128>}, {pipeline_mode = #tpu.pipeline_mode<synchronous>, transform_indices = @transform_16, window_bounds = array<i64: 1, 128>}, {transform_indices = @transform_17, window_bounds = array<i64: 8, 128>}]} {
    %c0 = arith.constant 0 : index
    %c0_0 = arith.constant 0 : index
    %c0_1 = arith.constant 0 : index
    %0 = vector.load %arg1[%c0, %c0_0, %c0_1] : memref<1x160x2xf32, #tpu.memory_space<vmem>>, vector<1x160x2xf32>
    %1 = vector.shape_cast %0 : vector<1x160x2xf32> to vector<160x2xf32>
    %c0_2 = arith.constant 0 : index
    %c0_3 = arith.constant 0 : index
    %2 = vector.load %arg3[%c0_2, %c0_3] : memref<2x32xf32, #tpu.memory_space<vmem>>, vector<2x32xf32>
    %cst = arith.constant dense<0.000000e+00> : vector<160x32xf32>
    %3 = tpu.matmul %1, %2, %cst {dimension_numbers = #tpu.dot_dimension_numbers<[1], [0], [0], [1], [0, 0, 1, 1], [], []>} : vector<160x2xf32>, vector<2x32xf32>, vector<160x32xf32> -> vector<160x32xf32>
    %c0_4 = arith.constant 0 : index
    %c0_5 = arith.constant 0 : index
    %4 = vector.load %arg2[%c0_4, %c0_5] : memref<2x32xf32, #tpu.memory_space<vmem>>, vector<2x32xf32>
    %cst_6 = arith.constant dense<0.000000e+00> : vector<160x32xf32>
    %5 = tpu.matmul %1, %4, %cst_6 {dimension_numbers = #tpu.dot_dimension_numbers<[1], [0], [0], [1], [0, 0, 1, 1], [], []>} : vector<160x2xf32>, vector<2x32xf32>, vector<160x32xf32> -> vector<160x32xf32>
    %c0_7 = arith.constant 0 : index
    %c0_8 = arith.constant 0 : index
    %6 = vector.load %arg4[%c0_7, %c0_8] : memref<2x32xf32, #tpu.memory_space<vmem>>, vector<2x32xf32>
    %cst_9 = arith.constant dense<0.000000e+00> : vector<160x32xf32>
    %7 = tpu.matmul %1, %6, %cst_9 {dimension_numbers = #tpu.dot_dimension_numbers<[1], [0], [0], [1], [0, 0, 1, 1], [], []>} : vector<160x2xf32>, vector<2x32xf32>, vector<160x32xf32> -> vector<160x32xf32>
    %c0_10 = arith.constant 0 : index
    %c0_11 = arith.constant 0 : index
    %8 = vector.load %arg5[%c0_10, %c0_11] : memref<1x32xf32, #tpu.memory_space<vmem>>, vector<1x32xf32>
    %9 = vector.broadcast %8 : vector<1x32xf32> to vector<160x32xf32>
    %10 = arith.addf %3, %9 : vector<160x32xf32>
    %c0_12 = arith.constant 0 : index
    %c0_13 = arith.constant 0 : index
    %11 = vector.load %arg19[%c0_12, %c0_13] : memref<160x32xf32, #tpu.memory_space<vmem>>, vector<160x32xf32>
    tpu.vector_store %arg19[%c0_12, %c0_13], %10 {strides = array<i32>} : memref<160x32xf32, #tpu.memory_space<vmem>>, vector<160x32xf32>,
    %c8 = arith.constant 8 : index
    %c0_14 = arith.constant 0 : index
    %12 = vector.load %arg19[%c8, %c0_14] : memref<160x32xf32, #tpu.memory_space<vmem>>, vector<152x32xf32>
    %13 = vector.extract_strided_slice %5 {offsets = [0, 0], sizes = [152, 32], strides = [1, 1]} : vector<160x32xf32> to vector<152x32xf32>
    %14 = arith.addf %12, %13 : vector<152x32xf32>
    %c8_15 = arith.constant 8 : index
    %c0_16 = arith.constant 0 : index
    %15 = vector.load %arg19[%c8_15, %c0_16] : memref<160x32xf32, #tpu.memory_space<vmem>>, vector<152x32xf32>
    tpu.vector_store %arg19[%c8_15, %c0_16], %14 {strides = array<i32>} : memref<160x32xf32, #tpu.memory_space<vmem>>, vector<152x32xf32>,
    %c0_17 = arith.constant 0 : index
    %c0_18 = arith.constant 0 : index
    %16 = vector.load %arg19[%c0_17, %c0_18] : memref<160x32xf32, #tpu.memory_space<vmem>>, vector<152x32xf32>
    %17 = vector.extract_strided_slice %7 {offsets = [8, 0], sizes = [152, 32], strides = [1, 1]} : vector<160x32xf32> to vector<152x32xf32>
    %18 = arith.addf %16, %17 : vector<152x32xf32>
    %cst_19 = arith.constant 0.000000e+00 : f32
    %19 = vector.broadcast %cst_19 : f32 to vector<152x32xf32>
    %20 = arith.maximumf %18, %19 : vector<152x32xf32>
    %c0_20 = arith.constant 0 : index
    %c0_21 = arith.constant 0 : index
    %21 = vector.load %arg19[%c0_20, %c0_21] : memref<160x32xf32, #tpu.memory_space<vmem>>, vector<152x32xf32>
    tpu.vector_store %arg19[%c0_20, %c0_21], %20 {strides = array<i32>} : memref<160x32xf32, #tpu.memory_space<vmem>>, vector<152x32xf32>,
    %c152 = arith.constant 152 : index
    %c0_22 = arith.constant 0 : index
    %22 = vector.load %arg19[%c152, %c0_22] : memref<160x32xf32, #tpu.memory_space<vmem>>, vector<8x32xf32>
    %cst_23 = arith.constant 0.000000e+00 : f32
    %23 = vector.broadcast %cst_23 : f32 to vector<8x32xf32>
    %24 = arith.maximumf %22, %23 : vector<8x32xf32>
    %c152_24 = arith.constant 152 : index
    %c0_25 = arith.constant 0 : index
    %25 = vector.load %arg19[%c152_24, %c0_25] : memref<160x32xf32, #tpu.memory_space<vmem>>, vector<8x32xf32>
    tpu.vector_store %arg19[%c152_24, %c0_25], %24 {strides = array<i32>} : memref<160x32xf32, #tpu.memory_space<vmem>>, vector<8x32xf32>,
    %c0_26 = arith.constant 0 : index
    %c0_27 = arith.constant 0 : index
    %26 = vector.load %arg19[%c0_26, %c0_27] : memref<160x32xf32, #tpu.memory_space<vmem>>, vector<160x32xf32>
    %c0_28 = arith.constant 0 : index
    %c0_29 = arith.constant 0 : index
    %27 = vector.load %arg7[%c0_28, %c0_29] : memref<32x64xf32, #tpu.memory_space<vmem>>, vector<32x64xf32>
    %cst_30 = arith.constant dense<0.000000e+00> : vector<160x64xf32>
    %28 = tpu.matmul %26, %27, %cst_30 {dimension_numbers = #tpu.dot_dimension_numbers<[1], [0], [0], [1], [0, 0, 1, 1], [], []>} : vector<160x32xf32>, vector<32x64xf32>, vector<160x64xf32> -> vector<160x64xf32>
    %c0_31 = arith.constant 0 : index
    %c0_32 = arith.constant 0 : index
    %29 = vector.load %arg6[%c0_31, %c0_32] : memref<32x64xf32, #tpu.memory_space<vmem>>, vector<32x64xf32>
    %cst_33 = arith.constant dense<0.000000e+00> : vector<160x64xf32>
    %30 = tpu.matmul %26, %29, %cst_33 {dimension_numbers = #tpu.dot_dimension_numbers<[1], [0], [0], [1], [0, 0, 1, 1], [], []>} : vector<160x32xf32>, vector<32x64xf32>, vector<160x64xf32> -> vector<160x64xf32>
    %c0_34 = arith.constant 0 : index
    %c0_35 = arith.constant 0 : index
    %31 = vector.load %arg8[%c0_34, %c0_35] : memref<32x64xf32, #tpu.memory_space<vmem>>, vector<32x64xf32>
    %cst_36 = arith.constant dense<0.000000e+00> : vector<160x64xf32>
    %32 = tpu.matmul %26, %31, %cst_36 {dimension_numbers = #tpu.dot_dimension_numbers<[1], [0], [0], [1], [0, 0, 1, 1], [], []>} : vector<160x32xf32>, vector<32x64xf32>, vector<160x64xf32> -> vector<160x64xf32>
    %c0_37 = arith.constant 0 : index
    %c0_38 = arith.constant 0 : index
    %33 = vector.load %arg9[%c0_37, %c0_38] : memref<1x64xf32, #tpu.memory_space<vmem>>, vector<1x64xf32>
    %34 = vector.broadcast %33 : vector<1x64xf32> to vector<160x64xf32>
    %35 = arith.addf %28, %34 : vector<160x64xf32>
    %c0_39 = arith.constant 0 : index
    %c0_40 = arith.constant 0 : index
    %36 = vector.load %arg20[%c0_39, %c0_40] : memref<160x64xf32, #tpu.memory_space<vmem>>, vector<160x64xf32>
    tpu.vector_store %arg20[%c0_39, %c0_40], %35 {strides = array<i32>} : memref<160x64xf32, #tpu.memory_space<vmem>>, vector<160x64xf32>,
    %c8_41 = arith.constant 8 : index
    %c0_42 = arith.constant 0 : index
    %37 = vector.load %arg20[%c8_41, %c0_42] : memref<160x64xf32, #tpu.memory_space<vmem>>, vector<152x64xf32>
    %38 = vector.extract_strided_slice %30 {offsets = [0, 0], sizes = [152, 64], strides = [1, 1]} : vector<160x64xf32> to vector<152x64xf32>
    %39 = arith.addf %37, %38 : vector<152x64xf32>
    %c8_43 = arith.constant 8 : index
    %c0_44 = arith.constant 0 : index
    %40 = vector.load %arg20[%c8_43, %c0_44] : memref<160x64xf32, #tpu.memory_space<vmem>>, vector<152x64xf32>
    tpu.vector_store %arg20[%c8_43, %c0_44], %39 {strides = array<i32>} : memref<160x64xf32, #tpu.memory_space<vmem>>, vector<152x64xf32>,
    %c0_45 = arith.constant 0 : index
    %c0_46 = arith.constant 0 : index
    %41 = vector.load %arg20[%c0_45, %c0_46] : memref<160x64xf32, #tpu.memory_space<vmem>>, vector<152x64xf32>
    %42 = vector.extract_strided_slice %32 {offsets = [8, 0], sizes = [152, 64], strides = [1, 1]} : vector<160x64xf32> to vector<152x64xf32>
    %43 = arith.addf %41, %42 : vector<152x64xf32>
    %cst_47 = arith.constant 0.000000e+00 : f32
    %44 = vector.broadcast %cst_47 : f32 to vector<152x64xf32>
    %45 = arith.maximumf %43, %44 : vector<152x64xf32>
    %c0_48 = arith.constant 0 : index
    %c0_49 = arith.constant 0 : index
    %46 = vector.load %arg20[%c0_48, %c0_49] : memref<160x64xf32, #tpu.memory_space<vmem>>, vector<152x64xf32>
    tpu.vector_store %arg20[%c0_48, %c0_49], %45 {strides = array<i32>} : memref<160x64xf32, #tpu.memory_space<vmem>>, vector<152x64xf32>,
    %c152_50 = arith.constant 152 : index
    %c0_51 = arith.constant 0 : index
    %47 = vector.load %arg20[%c152_50, %c0_51] : memref<160x64xf32, #tpu.memory_space<vmem>>, vector<8x64xf32>
    %cst_52 = arith.constant 0.000000e+00 : f32
    %48 = vector.broadcast %cst_52 : f32 to vector<8x64xf32>
    %49 = arith.maximumf %47, %48 : vector<8x64xf32>
    %c152_53 = arith.constant 152 : index
    %c0_54 = arith.constant 0 : index
    %50 = vector.load %arg20[%c152_53, %c0_54] : memref<160x64xf32, #tpu.memory_space<vmem>>, vector<8x64xf32>
    tpu.vector_store %arg20[%c152_53, %c0_54], %49 {strides = array<i32>} : memref<160x64xf32, #tpu.memory_space<vmem>>, vector<8x64xf32>,
    %c0_55 = arith.constant 0 : index
    %c0_56 = arith.constant 0 : index
    %51 = vector.load %arg20[%c0_55, %c0_56] : memref<160x64xf32, #tpu.memory_space<vmem>>, vector<8x64xf32>
    %c8_57 = arith.constant 8 : index
    %c0_58 = arith.constant 0 : index
    %52 = vector.load %arg20[%c8_57, %c0_58] : memref<160x64xf32, #tpu.memory_space<vmem>>, vector<8x64xf32>
    %53 = arith.maximumf %51, %52 : vector<8x64xf32>
    %c0_59 = arith.constant 0 : index
    %c0_60 = arith.constant 0 : index
    %54 = vector.load %arg21[%c0_59, %c0_60] : memref<80x64xf32, #tpu.memory_space<vmem>>, vector<8x64xf32>
    tpu.vector_store %arg21[%c0_59, %c0_60], %53 {strides = array<i32>} : memref<80x64xf32, #tpu.memory_space<vmem>>, vector<8x64xf32>,
    %c16 = arith.constant 16 : index
    %c0_61 = arith.constant 0 : index
    %55 = vector.load %arg20[%c16, %c0_61] : memref<160x64xf32, #tpu.memory_space<vmem>>, vector<8x64xf32>
    %c24 = arith.constant 24 : index
    %c0_62 = arith.constant 0 : index
    %56 = vector.load %arg20[%c24, %c0_62] : memref<160x64xf32, #tpu.memory_space<vmem>>, vector<8x64xf32>
    %57 = arith.maximumf %55, %56 : vector<8x64xf32>
    %c8_63 = arith.constant 8 : index
    %c0_64 = arith.constant 0 : index
    %58 = vector.load %arg21[%c8_63, %c0_64] : memref<80x64xf32, #tpu.memory_space<vmem>>, vector<8x64xf32>
    tpu.vector_store %arg21[%c8_63, %c0_64], %57 {strides = array<i32>} : memref<80x64xf32, #tpu.memory_space<vmem>>, vector<8x64xf32>,
    %c32 = arith.constant 32 : index
    %c0_65 = arith.constant 0 : index
    %59 = vector.load %arg20[%c32, %c0_65] : memref<160x64xf32, #tpu.memory_space<vmem>>, vector<8x64xf32>
    %c40 = arith.constant 40 : index
    %c0_66 = arith.constant 0 : index
    %60 = vector.load %arg20[%c40, %c0_66] : memref<160x64xf32, #tpu.memory_space<vmem>>, vector<8x64xf32>
    %61 = arith.maximumf %59, %60 : vector<8x64xf32>
    %c16_67 = arith.constant 16 : index
    %c0_68 = arith.constant 0 : index
    %62 = vector.load %arg21[%c16_67, %c0_68] : memref<80x64xf32, #tpu.memory_space<vmem>>, vector<8x64xf32>
    tpu.vector_store %arg21[%c16_67, %c0_68], %61 {strides = array<i32>} : memref<80x64xf32, #tpu.memory_space<vmem>>, vector<8x64xf32>,
    %c48 = arith.constant 48 : index
    %c0_69 = arith.constant 0 : index
    %63 = vector.load %arg20[%c48, %c0_69] : memref<160x64xf32, #tpu.memory_space<vmem>>, vector<8x64xf32>
    %c56 = arith.constant 56 : index
    %c0_70 = arith.constant 0 : index
    %64 = vector.load %arg20[%c56, %c0_70] : memref<160x64xf32, #tpu.memory_space<vmem>>, vector<8x64xf32>
    %65 = arith.maximumf %63, %64 : vector<8x64xf32>
    %c24_71 = arith.constant 24 : index
    %c0_72 = arith.constant 0 : index
    %66 = vector.load %arg21[%c24_71, %c0_72] : memref<80x64xf32, #tpu.memory_space<vmem>>, vector<8x64xf32>
    tpu.vector_store %arg21[%c24_71, %c0_72], %65 {strides = array<i32>} : memref<80x64xf32, #tpu.memory_space<vmem>>, vector<8x64xf32>,
    %c64 = arith.constant 64 : index
    %c0_73 = arith.constant 0 : index
    %67 = vector.load %arg20[%c64, %c0_73] : memref<160x64xf32, #tpu.memory_space<vmem>>, vector<8x64xf32>
    %c72 = arith.constant 72 : index
    %c0_74 = arith.constant 0 : index
    %68 = vector.load %arg20[%c72, %c0_74] : memref<160x64xf32, #tpu.memory_space<vmem>>, vector<8x64xf32>
    %69 = arith.maximumf %67, %68 : vector<8x64xf32>
    %c32_75 = arith.constant 32 : index
    %c0_76 = arith.constant 0 : index
    %70 = vector.load %arg21[%c32_75, %c0_76] : memref<80x64xf32, #tpu.memory_space<vmem>>, vector<8x64xf32>
    tpu.vector_store %arg21[%c32_75, %c0_76], %69 {strides = array<i32>} : memref<80x64xf32, #tpu.memory_space<vmem>>, vector<8x64xf32>,
    %c80 = arith.constant 80 : index
    %c0_77 = arith.constant 0 : index
    %71 = vector.load %arg20[%c80, %c0_77] : memref<160x64xf32, #tpu.memory_space<vmem>>, vector<8x64xf32>
    %c88 = arith.constant 88 : index
    %c0_78 = arith.constant 0 : index
    %72 = vector.load %arg20[%c88, %c0_78] : memref<160x64xf32, #tpu.memory_space<vmem>>, vector<8x64xf32>
    %73 = arith.maximumf %71, %72 : vector<8x64xf32>
    %c40_79 = arith.constant 40 : index
    %c0_80 = arith.constant 0 : index
    %74 = vector.load %arg21[%c40_79, %c0_80] : memref<80x64xf32, #tpu.memory_space<vmem>>, vector<8x64xf32>
    tpu.vector_store %arg21[%c40_79, %c0_80], %73 {strides = array<i32>} : memref<80x64xf32, #tpu.memory_space<vmem>>, vector<8x64xf32>,
    %c96 = arith.constant 96 : index
    %c0_81 = arith.constant 0 : index
    %75 = vector.load %arg20[%c96, %c0_81] : memref<160x64xf32, #tpu.memory_space<vmem>>, vector<8x64xf32>
    %c104 = arith.constant 104 : index
    %c0_82 = arith.constant 0 : index
    %76 = vector.load %arg20[%c104, %c0_82] : memref<160x64xf32, #tpu.memory_space<vmem>>, vector<8x64xf32>
    %77 = arith.maximumf %75, %76 : vector<8x64xf32>
    %c48_83 = arith.constant 48 : index
    %c0_84 = arith.constant 0 : index
    %78 = vector.load %arg21[%c48_83, %c0_84] : memref<80x64xf32, #tpu.memory_space<vmem>>, vector<8x64xf32>
    tpu.vector_store %arg21[%c48_83, %c0_84], %77 {strides = array<i32>} : memref<80x64xf32, #tpu.memory_space<vmem>>, vector<8x64xf32>,
    %c112 = arith.constant 112 : index
    %c0_85 = arith.constant 0 : index
    %79 = vector.load %arg20[%c112, %c0_85] : memref<160x64xf32, #tpu.memory_space<vmem>>, vector<8x64xf32>
    %c120 = arith.constant 120 : index
    %c0_86 = arith.constant 0 : index
    %80 = vector.load %arg20[%c120, %c0_86] : memref<160x64xf32, #tpu.memory_space<vmem>>, vector<8x64xf32>
    %81 = arith.maximumf %79, %80 : vector<8x64xf32>
    %c56_87 = arith.constant 56 : index
    %c0_88 = arith.constant 0 : index
    %82 = vector.load %arg21[%c56_87, %c0_88] : memref<80x64xf32, #tpu.memory_space<vmem>>, vector<8x64xf32>
    tpu.vector_store %arg21[%c56_87, %c0_88], %81 {strides = array<i32>} : memref<80x64xf32, #tpu.memory_space<vmem>>, vector<8x64xf32>,
    %c128 = arith.constant 128 : index
    %c0_89 = arith.constant 0 : index
    %83 = vector.load %arg20[%c128, %c0_89] : memref<160x64xf32, #tpu.memory_space<vmem>>, vector<8x64xf32>
    %c136 = arith.constant 136 : index
    %c0_90 = arith.constant 0 : index
    %84 = vector.load %arg20[%c136, %c0_90] : memref<160x64xf32, #tpu.memory_space<vmem>>, vector<8x64xf32>
    %85 = arith.maximumf %83, %84 : vector<8x64xf32>
    %c64_91 = arith.constant 64 : index
    %c0_92 = arith.constant 0 : index
    %86 = vector.load %arg21[%c64_91, %c0_92] : memref<80x64xf32, #tpu.memory_space<vmem>>, vector<8x64xf32>
    tpu.vector_store %arg21[%c64_91, %c0_92], %85 {strides = array<i32>} : memref<80x64xf32, #tpu.memory_space<vmem>>, vector<8x64xf32>,
    %c144 = arith.constant 144 : index
    %c0_93 = arith.constant 0 : index
    %87 = vector.load %arg20[%c144, %c0_93] : memref<160x64xf32, #tpu.memory_space<vmem>>, vector<8x64xf32>
    %c152_94 = arith.constant 152 : index
    %c0_95 = arith.constant 0 : index
    %88 = vector.load %arg20[%c152_94, %c0_95] : memref<160x64xf32, #tpu.memory_space<vmem>>, vector<8x64xf32>
    %89 = arith.maximumf %87, %88 : vector<8x64xf32>
    %c72_96 = arith.constant 72 : index
    %c0_97 = arith.constant 0 : index
    %90 = vector.load %arg21[%c72_96, %c0_97] : memref<80x64xf32, #tpu.memory_space<vmem>>, vector<8x64xf32>
    tpu.vector_store %arg21[%c72_96, %c0_97], %89 {strides = array<i32>} : memref<80x64xf32, #tpu.memory_space<vmem>>, vector<8x64xf32>,
    %c0_98 = arith.constant 0 : index
    %c0_99 = arith.constant 0 : index
    %91 = vector.load %arg21[%c0_98, %c0_99] : memref<80x64xf32, #tpu.memory_space<vmem>>, vector<80x64xf32>
    %c0_100 = arith.constant 0 : index
    %c0_101 = arith.constant 0 : index
    %92 = vector.load %arg11[%c0_100, %c0_101] : memref<64x128xf32, #tpu.memory_space<vmem>>, vector<64x128xf32>
    %cst_102 = arith.constant dense<0.000000e+00> : vector<80x128xf32>
    %93 = tpu.matmul %91, %92, %cst_102 {dimension_numbers = #tpu.dot_dimension_numbers<[1], [0], [0], [1], [0, 0, 1, 1], [], []>} : vector<80x64xf32>, vector<64x128xf32>, vector<80x128xf32> -> vector<80x128xf32>
    %c0_103 = arith.constant 0 : index
    %c0_104 = arith.constant 0 : index
    %94 = vector.load %arg10[%c0_103, %c0_104] : memref<64x128xf32, #tpu.memory_space<vmem>>, vector<64x128xf32>
    %cst_105 = arith.constant dense<0.000000e+00> : vector<80x128xf32>
    %95 = tpu.matmul %91, %94, %cst_105 {dimension_numbers = #tpu.dot_dimension_numbers<[1], [0], [0], [1], [0, 0, 1, 1], [], []>} : vector<80x64xf32>, vector<64x128xf32>, vector<80x128xf32> -> vector<80x128xf32>
    %c0_106 = arith.constant 0 : index
    %c0_107 = arith.constant 0 : index
    %96 = vector.load %arg12[%c0_106, %c0_107] : memref<64x128xf32, #tpu.memory_space<vmem>>, vector<64x128xf32>
    %cst_108 = arith.constant dense<0.000000e+00> : vector<80x128xf32>
    %97 = tpu.matmul %91, %96, %cst_108 {dimension_numbers = #tpu.dot_dimension_numbers<[1], [0], [0], [1], [0, 0, 1, 1], [], []>} : vector<80x64xf32>, vector<64x128xf32>, vector<80x128xf32> -> vector<80x128xf32>
    %c0_109 = arith.constant 0 : index
    %c0_110 = arith.constant 0 : index
    %98 = vector.load %arg13[%c0_109, %c0_110] : memref<1x128xf32, #tpu.memory_space<vmem>>, vector<1x128xf32>
    %99 = vector.broadcast %98 : vector<1x128xf32> to vector<80x128xf32>
    %100 = arith.addf %93, %99 : vector<80x128xf32>
    %c0_111 = arith.constant 0 : index
    %c0_112 = arith.constant 0 : index
    %101 = vector.load %arg22[%c0_111, %c0_112] : memref<80x128xf32, #tpu.memory_space<vmem>>, vector<80x128xf32>
    tpu.vector_store %arg22[%c0_111, %c0_112], %100 {strides = array<i32>} : memref<80x128xf32, #tpu.memory_space<vmem>>, vector<80x128xf32>,
    %c8_113 = arith.constant 8 : index
    %c0_114 = arith.constant 0 : index
    %102 = vector.load %arg22[%c8_113, %c0_114] : memref<80x128xf32, #tpu.memory_space<vmem>>, vector<72x128xf32>
    %103 = vector.extract_strided_slice %95 {offsets = [0, 0], sizes = [72, 128], strides = [1, 1]} : vector<80x128xf32> to vector<72x128xf32>
    %104 = arith.addf %102, %103 : vector<72x128xf32>
    %c8_115 = arith.constant 8 : index
    %c0_116 = arith.constant 0 : index
    %105 = vector.load %arg22[%c8_115, %c0_116] : memref<80x128xf32, #tpu.memory_space<vmem>>, vector<72x128xf32>
    tpu.vector_store %arg22[%c8_115, %c0_116], %104 {strides = array<i32>} : memref<80x128xf32, #tpu.memory_space<vmem>>, vector<72x128xf32>,
    %c0_117 = arith.constant 0 : index
    %c0_118 = arith.constant 0 : index
    %106 = vector.load %arg22[%c0_117, %c0_118] : memref<80x128xf32, #tpu.memory_space<vmem>>, vector<72x128xf32>
    %107 = vector.extract_strided_slice %97 {offsets = [8, 0], sizes = [72, 128], strides = [1, 1]} : vector<80x128xf32> to vector<72x128xf32>
    %108 = arith.addf %106, %107 : vector<72x128xf32>
    %cst_119 = arith.constant 0.000000e+00 : f32
    %109 = vector.broadcast %cst_119 : f32 to vector<72x128xf32>
    %110 = arith.maximumf %108, %109 : vector<72x128xf32>
    %c0_120 = arith.constant 0 : index
    %c0_121 = arith.constant 0 : index
    %111 = vector.load %arg22[%c0_120, %c0_121] : memref<80x128xf32, #tpu.memory_space<vmem>>, vector<72x128xf32>
    tpu.vector_store %arg22[%c0_120, %c0_121], %110 {strides = array<i32>} : memref<80x128xf32, #tpu.memory_space<vmem>>, vector<72x128xf32>,
    %c72_122 = arith.constant 72 : index
    %c0_123 = arith.constant 0 : index
    %112 = vector.load %arg22[%c72_122, %c0_123] : memref<80x128xf32, #tpu.memory_space<vmem>>, vector<8x128xf32>
    %cst_124 = arith.constant 0.000000e+00 : f32
    %113 = vector.broadcast %cst_124 : f32 to vector<8x128xf32>
    %114 = arith.maximumf %112, %113 : vector<8x128xf32>
    %c72_125 = arith.constant 72 : index
    %c0_126 = arith.constant 0 : index
    %115 = vector.load %arg22[%c72_125, %c0_126] : memref<80x128xf32, #tpu.memory_space<vmem>>, vector<8x128xf32>
    tpu.vector_store %arg22[%c72_125, %c0_126], %114 {strides = array<i32>} : memref<80x128xf32, #tpu.memory_space<vmem>>, vector<8x128xf32>,
    %c0_127 = arith.constant 0 : index
    %c0_128 = arith.constant 0 : index
    %116 = vector.load %arg22[%c0_127, %c0_128] : memref<80x128xf32, #tpu.memory_space<vmem>>, vector<8x128xf32>
    %c8_129 = arith.constant 8 : index
    %c0_130 = arith.constant 0 : index
    %117 = vector.load %arg22[%c8_129, %c0_130] : memref<80x128xf32, #tpu.memory_space<vmem>>, vector<8x128xf32>
    %118 = arith.maximumf %116, %117 : vector<8x128xf32>
    %c0_131 = arith.constant 0 : index
    %c0_132 = arith.constant 0 : index
    %119 = vector.load %arg23[%c0_131, %c0_132] : memref<40x128xf32, #tpu.memory_space<vmem>>, vector<8x128xf32>
    tpu.vector_store %arg23[%c0_131, %c0_132], %118 {strides = array<i32>} : memref<40x128xf32, #tpu.memory_space<vmem>>, vector<8x128xf32>,
    %c16_133 = arith.constant 16 : index
    %c0_134 = arith.constant 0 : index
    %120 = vector.load %arg22[%c16_133, %c0_134] : memref<80x128xf32, #tpu.memory_space<vmem>>, vector<8x128xf32>
    %c24_135 = arith.constant 24 : index
    %c0_136 = arith.constant 0 : index
    %121 = vector.load %arg22[%c24_135, %c0_136] : memref<80x128xf32, #tpu.memory_space<vmem>>, vector<8x128xf32>
    %122 = arith.maximumf %120, %121 : vector<8x128xf32>
    %c8_137 = arith.constant 8 : index
    %c0_138 = arith.constant 0 : index
    %123 = vector.load %arg23[%c8_137, %c0_138] : memref<40x128xf32, #tpu.memory_space<vmem>>, vector<8x128xf32>
    tpu.vector_store %arg23[%c8_137, %c0_138], %122 {strides = array<i32>} : memref<40x128xf32, #tpu.memory_space<vmem>>, vector<8x128xf32>,
    %c32_139 = arith.constant 32 : index
    %c0_140 = arith.constant 0 : index
    %124 = vector.load %arg22[%c32_139, %c0_140] : memref<80x128xf32, #tpu.memory_space<vmem>>, vector<8x128xf32>
    %c40_141 = arith.constant 40 : index
    %c0_142 = arith.constant 0 : index
    %125 = vector.load %arg22[%c40_141, %c0_142] : memref<80x128xf32, #tpu.memory_space<vmem>>, vector<8x128xf32>
    %126 = arith.maximumf %124, %125 : vector<8x128xf32>
    %c16_143 = arith.constant 16 : index
    %c0_144 = arith.constant 0 : index
    %127 = vector.load %arg23[%c16_143, %c0_144] : memref<40x128xf32, #tpu.memory_space<vmem>>, vector<8x128xf32>
    tpu.vector_store %arg23[%c16_143, %c0_144], %126 {strides = array<i32>} : memref<40x128xf32, #tpu.memory_space<vmem>>, vector<8x128xf32>,
    %c48_145 = arith.constant 48 : index
    %c0_146 = arith.constant 0 : index
    %128 = vector.load %arg22[%c48_145, %c0_146] : memref<80x128xf32, #tpu.memory_space<vmem>>, vector<8x128xf32>
    %c56_147 = arith.constant 56 : index
    %c0_148 = arith.constant 0 : index
    %129 = vector.load %arg22[%c56_147, %c0_148] : memref<80x128xf32, #tpu.memory_space<vmem>>, vector<8x128xf32>
    %130 = arith.maximumf %128, %129 : vector<8x128xf32>
    %c24_149 = arith.constant 24 : index
    %c0_150 = arith.constant 0 : index
    %131 = vector.load %arg23[%c24_149, %c0_150] : memref<40x128xf32, #tpu.memory_space<vmem>>, vector<8x128xf32>
    tpu.vector_store %arg23[%c24_149, %c0_150], %130 {strides = array<i32>} : memref<40x128xf32, #tpu.memory_space<vmem>>, vector<8x128xf32>,
    %c64_151 = arith.constant 64 : index
    %c0_152 = arith.constant 0 : index
    %132 = vector.load %arg22[%c64_151, %c0_152] : memref<80x128xf32, #tpu.memory_space<vmem>>, vector<8x128xf32>
    %c72_153 = arith.constant 72 : index
    %c0_154 = arith.constant 0 : index
    %133 = vector.load %arg22[%c72_153, %c0_154] : memref<80x128xf32, #tpu.memory_space<vmem>>, vector<8x128xf32>
    %134 = arith.maximumf %132, %133 : vector<8x128xf32>
    %c32_155 = arith.constant 32 : index
    %c0_156 = arith.constant 0 : index
    %135 = vector.load %arg23[%c32_155, %c0_156] : memref<40x128xf32, #tpu.memory_space<vmem>>, vector<8x128xf32>
    tpu.vector_store %arg23[%c32_155, %c0_156], %134 {strides = array<i32>} : memref<40x128xf32, #tpu.memory_space<vmem>>, vector<8x128xf32>,
    %c0_157 = arith.constant 0 : index
    %c0_158 = arith.constant 0 : index
    %136 = vector.load %arg23[%c0_157, %c0_158] : memref<40x128xf32, #tpu.memory_space<vmem>>, vector<8x128xf32>
    %c0_159 = arith.constant 0 : index
    %c0_160 = arith.constant 0 : index
    %c0_161 = arith.constant 0 : index
    %137 = vector.load %arg14[%c0_159, %c0_160, %c0_161] : memref<5x128x128xf32, #tpu.memory_space<vmem>>, vector<1x128x128xf32>
    %138 = vector.shape_cast %137 : vector<1x128x128xf32> to vector<128x128xf32>
    %cst_162 = arith.constant dense<0.000000e+00> : vector<8x128xf32>
    %139 = tpu.matmul %136, %138, %cst_162 {dimension_numbers = #tpu.dot_dimension_numbers<[1], [0], [0], [1], [0, 0, 1, 1], [], []>} : vector<8x128xf32>, vector<128x128xf32>, vector<8x128xf32> -> vector<8x128xf32>
    %c8_163 = arith.constant 8 : index
    %c0_164 = arith.constant 0 : index
    %140 = vector.load %arg23[%c8_163, %c0_164] : memref<40x128xf32, #tpu.memory_space<vmem>>, vector<8x128xf32>
    %c1 = arith.constant 1 : index
    %c0_165 = arith.constant 0 : index
    %c0_166 = arith.constant 0 : index
    %141 = vector.load %arg14[%c1, %c0_165, %c0_166] : memref<5x128x128xf32, #tpu.memory_space<vmem>>, vector<1x128x128xf32>
    %142 = vector.shape_cast %141 : vector<1x128x128xf32> to vector<128x128xf32>
    %cst_167 = arith.constant dense<0.000000e+00> : vector<8x128xf32>
    %143 = tpu.matmul %140, %142, %cst_167 {dimension_numbers = #tpu.dot_dimension_numbers<[1], [0], [0], [1], [0, 0, 1, 1], [], []>} : vector<8x128xf32>, vector<128x128xf32>, vector<8x128xf32> -> vector<8x128xf32>
    %144 = arith.addf %139, %143 : vector<8x128xf32>
    %c16_168 = arith.constant 16 : index
    %c0_169 = arith.constant 0 : index
    %145 = vector.load %arg23[%c16_168, %c0_169] : memref<40x128xf32, #tpu.memory_space<vmem>>, vector<8x128xf32>
    %c2 = arith.constant 2 : index
    %c0_170 = arith.constant 0 : index
    %c0_171 = arith.constant 0 : index
    %146 = vector.load %arg14[%c2, %c0_170, %c0_171] : memref<5x128x128xf32, #tpu.memory_space<vmem>>, vector<1x128x128xf32>
    %147 = vector.shape_cast %146 : vector<1x128x128xf32> to vector<128x128xf32>
    %cst_172 = arith.constant dense<0.000000e+00> : vector<8x128xf32>
    %148 = tpu.matmul %145, %147, %cst_172 {dimension_numbers = #tpu.dot_dimension_numbers<[1], [0], [0], [1], [0, 0, 1, 1], [], []>} : vector<8x128xf32>, vector<128x128xf32>, vector<8x128xf32> -> vector<8x128xf32>
    %149 = arith.addf %144, %148 : vector<8x128xf32>
    %c24_173 = arith.constant 24 : index
    %c0_174 = arith.constant 0 : index
    %150 = vector.load %arg23[%c24_173, %c0_174] : memref<40x128xf32, #tpu.memory_space<vmem>>, vector<8x128xf32>
    %c3 = arith.constant 3 : index
    %c0_175 = arith.constant 0 : index
    %c0_176 = arith.constant 0 : index
    %151 = vector.load %arg14[%c3, %c0_175, %c0_176] : memref<5x128x128xf32, #tpu.memory_space<vmem>>, vector<1x128x128xf32>
    %152 = vector.shape_cast %151 : vector<1x128x128xf32> to vector<128x128xf32>
    %cst_177 = arith.constant dense<0.000000e+00> : vector<8x128xf32>
    %153 = tpu.matmul %150, %152, %cst_177 {dimension_numbers = #tpu.dot_dimension_numbers<[1], [0], [0], [1], [0, 0, 1, 1], [], []>} : vector<8x128xf32>, vector<128x128xf32>, vector<8x128xf32> -> vector<8x128xf32>
    %154 = arith.addf %149, %153 : vector<8x128xf32>
    %c32_178 = arith.constant 32 : index
    %c0_179 = arith.constant 0 : index
    %155 = vector.load %arg23[%c32_178, %c0_179] : memref<40x128xf32, #tpu.memory_space<vmem>>, vector<8x128xf32>
    %c4 = arith.constant 4 : index
    %c0_180 = arith.constant 0 : index
    %c0_181 = arith.constant 0 : index
    %156 = vector.load %arg14[%c4, %c0_180, %c0_181] : memref<5x128x128xf32, #tpu.memory_space<vmem>>, vector<1x128x128xf32>
    %157 = vector.shape_cast %156 : vector<1x128x128xf32> to vector<128x128xf32>
    %cst_182 = arith.constant dense<0.000000e+00> : vector<8x128xf32>
    %158 = tpu.matmul %155, %157, %cst_182 {dimension_numbers = #tpu.dot_dimension_numbers<[1], [0], [0], [1], [0, 0, 1, 1], [], []>} : vector<8x128xf32>, vector<128x128xf32>, vector<8x128xf32> -> vector<8x128xf32>
    %159 = arith.addf %154, %158 : vector<8x128xf32>
    %c0_183 = arith.constant 0 : index
    %c0_184 = arith.constant 0 : index
    %160 = vector.load %arg15[%c0_183, %c0_184] : memref<1x128xf32, #tpu.memory_space<vmem>>, vector<1x128xf32>
    %161 = vector.broadcast %160 : vector<1x128xf32> to vector<8x128xf32>
    %162 = arith.addf %159, %161 : vector<8x128xf32>
    %cst_185 = arith.constant 0.000000e+00 : f32
    %163 = vector.broadcast %cst_185 : f32 to vector<8x128xf32>
    %164 = arith.maximumf %162, %163 : vector<8x128xf32>
    %c0_186 = arith.constant 0 : index
    %c0_187 = arith.constant 0 : index
    %165 = vector.load %arg16[%c0_186, %c0_187] : memref<128x128xf32, #tpu.memory_space<vmem>>, vector<128x128xf32>
    %cst_188 = arith.constant dense<0.000000e+00> : vector<8x128xf32>
    %166 = tpu.matmul %164, %165, %cst_188 {dimension_numbers = #tpu.dot_dimension_numbers<[1], [0], [0], [1], [0, 0, 1, 1], [], []>} : vector<8x128xf32>, vector<128x128xf32>, vector<8x128xf32> -> vector<8x128xf32>
    %c0_189 = arith.constant 0 : index
    %c0_190 = arith.constant 0 : index
    %167 = vector.load %arg17[%c0_189, %c0_190] : memref<1x128xf32, #tpu.memory_space<vmem>>, vector<1x128xf32>
    %168 = vector.broadcast %167 : vector<1x128xf32> to vector<8x128xf32>
    %169 = arith.addf %166, %168 : vector<8x128xf32>
    %c0_191 = arith.constant 0 : index
    %c0_192 = arith.constant 0 : index
    %170 = vector.load %arg18[%c0_191, %c0_192] : memref<8x128xf32, #tpu.memory_space<vmem>>, vector<8x128xf32>
    tpu.vector_store %arg18[%c0_191, %c0_192], %169 {strides = array<i32>} : memref<8x128xf32, #tpu.memory_space<vmem>>, vector<8x128xf32>,
    return
  }
  func.func @transform_0(%arg0: i32) -> (i32, i32, i32) {
    %c0_i32 = arith.constant 0 : i32
    %c0_i32_0 = arith.constant 0 : i32
    %c0_i32_1 = arith.constant 0 : i32
    return %arg0, %c0_i32, %c0_i32_0 : i32, i32, i32
  }
  func.func @transform_1(%arg0: i32) -> (i32, i32) {
    %c0_i32 = arith.constant 0 : i32
    %c0_i32_0 = arith.constant 0 : i32
    %c0_i32_1 = arith.constant 0 : i32
    return %c0_i32, %c0_i32_0 : i32, i32
  }
  func.func @transform_2(%arg0: i32) -> (i32, i32) {
    %c0_i32 = arith.constant 0 : i32
    %c0_i32_0 = arith.constant 0 : i32
    %c0_i32_1 = arith.constant 0 : i32
    return %c0_i32, %c0_i32_0 : i32, i32
  }
  func.func @transform_3(%arg0: i32) -> (i32, i32) {
    %c0_i32 = arith.constant 0 : i32
    %c0_i32_0 = arith.constant 0 : i32
    %c0_i32_1 = arith.constant 0 : i32
    return %c0_i32, %c0_i32_0 : i32, i32
  }
  func.func @transform_4(%arg0: i32) -> (i32, i32) {
    %c0_i32 = arith.constant 0 : i32
    %c0_i32_0 = arith.constant 0 : i32
    %c0_i32_1 = arith.constant 0 : i32
    return %c0_i32, %c0_i32_0 : i32, i32
  }
  func.func @transform_5(%arg0: i32) -> (i32, i32) {
    %c0_i32 = arith.constant 0 : i32
    %c0_i32_0 = arith.constant 0 : i32
    %c0_i32_1 = arith.constant 0 : i32
    return %c0_i32, %c0_i32_0 : i32, i32
  }
  func.func @transform_6(%arg0: i32) -> (i32, i32) {
    %c0_i32 = arith.constant 0 : i32
    %c0_i32_0 = arith.constant 0 : i32
    %c0_i32_1 = arith.constant 0 : i32
    return %c0_i32, %c0_i32_0 : i32, i32
  }
  func.func @transform_7(%arg0: i32) -> (i32, i32) {
    %c0_i32 = arith.constant 0 : i32
    %c0_i32_0 = arith.constant 0 : i32
    %c0_i32_1 = arith.constant 0 : i32
    return %c0_i32, %c0_i32_0 : i32, i32
  }
  func.func @transform_8(%arg0: i32) -> (i32, i32) {
    %c0_i32 = arith.constant 0 : i32
    %c0_i32_0 = arith.constant 0 : i32
    %c0_i32_1 = arith.constant 0 : i32
    return %c0_i32, %c0_i32_0 : i32, i32
  }
  func.func @transform_9(%arg0: i32) -> (i32, i32) {
    %c0_i32 = arith.constant 0 : i32
    %c0_i32_0 = arith.constant 0 : i32
    %c0_i32_1 = arith.constant 0 : i32
    return %c0_i32, %c0_i32_0 : i32, i32
  }
  func.func @transform_10(%arg0: i32) -> (i32, i32) {
    %c0_i32 = arith.constant 0 : i32
    %c0_i32_0 = arith.constant 0 : i32
    %c0_i32_1 = arith.constant 0 : i32
    return %c0_i32, %c0_i32_0 : i32, i32
  }
  func.func @transform_11(%arg0: i32) -> (i32, i32) {
    %c0_i32 = arith.constant 0 : i32
    %c0_i32_0 = arith.constant 0 : i32
    %c0_i32_1 = arith.constant 0 : i32
    return %c0_i32, %c0_i32_0 : i32, i32
  }
  func.func @transform_12(%arg0: i32) -> (i32, i32) {
    %c0_i32 = arith.constant 0 : i32
    %c0_i32_0 = arith.constant 0 : i32
    %c0_i32_1 = arith.constant 0 : i32
    return %c0_i32, %c0_i32_0 : i32, i32
  }
  func.func @transform_13(%arg0: i32) -> (i32, i32, i32) {
    %c0_i32 = arith.constant 0 : i32
    %c0_i32_0 = arith.constant 0 : i32
    %c0_i32_1 = arith.constant 0 : i32
    %c0_i32_2 = arith.constant 0 : i32
    return %c0_i32, %c0_i32_0, %c0_i32_1 : i32, i32, i32
  }
  func.func @transform_14(%arg0: i32) -> (i32, i32) {
    %c0_i32 = arith.constant 0 : i32
    %c0_i32_0 = arith.constant 0 : i32
    %c0_i32_1 = arith.constant 0 : i32
    return %c0_i32, %c0_i32_0 : i32, i32
  }
  func.func @transform_15(%arg0: i32) -> (i32, i32) {
    %c0_i32 = arith.constant 0 : i32
    %c0_i32_0 = arith.constant 0 : i32
    %c0_i32_1 = arith.constant 0 : i32
    return %c0_i32, %c0_i32_0 : i32, i32
  }
  func.func @transform_16(%arg0: i32) -> (i32, i32) {
    %c0_i32 = arith.constant 0 : i32
    %c0_i32_0 = arith.constant 0 : i32
    %c0_i32_1 = arith.constant 0 : i32
    return %c0_i32, %c0_i32_0 : i32, i32
  }
  func.func @transform_17(%arg0: i32) -> (i32, i32) {
    %c0_i32 = arith.constant 0 : i32
    %c0_i32_0 = arith.constant 0 : i32
    return %arg0, %c0_i32 : i32, i32
  }
}

</mosaic_0001>

<bundles_post_ra>
// kernel: cnn_forward.1
= control target key start
LH: loop header
LB: loop body
LE: loop exit
PB: predicated region body
PF: predicated region fallthrough
CT: control target
= control target key end

     0   :  { %s2713_s0 = inlined_call_operand.vmem [shape: f32[1,160,2], index: 0, kind: input, shape index: {}]   ;;  %s2714_s1 = inlined_call_operand.vmem [shape: f32[2,32], index: 1, kind: input, shape index: {}]   ;;  %s2715_s2 = inlined_call_operand.vmem [shape: f32[2,32], index: 2, kind: input, shape index: {}]   ;;  %s2716_s3 = inlined_call_operand.vmem [shape: f32[2,32], index: 3, kind: input, shape index: {}]   ;;  %s2717_s4 = inlined_call_operand.vmem [shape: f32[1,32], index: 4, kind: input, shape index: {}]   ;;  %s2718_s5 = inlined_call_operand.hbm [shape: f32[32,64], index: 5, kind: input, shape index: {}]   ;;  %s2719_s6 = inlined_call_operand.hbm [shape: f32[32,64], index: 6, kind: input, shape index: {}]   ;;  %s2720_s7 = inlined_call_operand.hbm [shape: f32[32,64], index: 7, kind: input, shape index: {}]   ;;  %s2721_s8 = inlined_call_operand.vmem [shape: f32[1,64], index: 8, kind: input, shape index: {}]   ;;  %s2722_s9 = inlined_call_operand.vmem [shape: f32[64,128], index: 9, kind: input, shape index: {}]   ;;  %s2723_s10 = inlined_call_operand.hbm [shape: f32[64,128], index: 10, kind: input, shape index: {}]   ;;  %s2724_s11 = inlined_call_operand.hbm [shape: f32[64,128], index: 11, kind: input, shape index: {}]   ;;  %s2725_s12 = inlined_call_operand.vmem [shape: f32[1,128], index: 12, kind: input, shape index: {}]   ;;  %s2726_s13 = inlined_call_operand.hbm [shape: f32[5,128,128], index: 13, kind: input, shape index: {}]   ;;  %s2727_s14 = inlined_call_operand.vmem [shape: f32[1,128], index: 14, kind: input, shape index: {}]   ;;  %s2728_s15 = inlined_call_operand.vmem [shape: f32[128,128], index: 15, kind: input, shape index: {}]   ;;  %s2729_s16 = inlined_call_operand.vmem [shape: f32[1,128], index: 16, kind: input, shape index: {}]   ;;  %s2730_s17 = inlined_call_operand.vmem [shape: f32[8,128], index: 17, kind: output, shape index: {}]  }
   0x1   :  { %2732 = sst [smem:[#allocation21_spill]] %s2713_s0 }
   0x2   :  { %2733 = sst [smem:[#allocation22_spill]] %s2714_s1 }
   0x3   :  { %22 = vsyncpa [#allocation8], 0 }
   0x4   :  { %23 = vsyncpa [#allocation10], 0 }
   0x5   :  { %24 = vsyncpa [#allocation13], 0 }
   0x6   :  { %25 = vsyncpa [#allocation16], 0  ;;  %s53_s26 = sshll.u32 %s2719_s6, 4  ;;  %s2024_s27 = smov [#allocation9]   ;;  %s54_s26 = int_to_ptr.hbm [resolvable:$true] %s53_s26 }
   0x7   :  { %s55_s28 = sshll.u32 %s2024_s27, 4  ;;  %s83_s30 = sshll.u32 %s2723_s10, 4  ;;  %s56_s28 = int_to_ptr.vmem [resolvable:$true] %s55_s28  ;;  %s84_s30 = int_to_ptr.hbm [resolvable:$true] %s83_s30 }
   0x8   :  { %s2025_s18 = smov 128   ;;  %s2026_s19 = smov 8  }
   0x9   :  { %61 = dma.hbm_to_vmem [thread:$0]  %s54_s26, 512, %s56_s28, [#allocation10], %s2025_s18, %s2025_s18, %s2026_s19  }
   0xa   :  { %s2027_s1 = smov [#allocation12]   ;;  %s40_s6 = sshll.u32 %s2718_s5, 4  ;;  %s41_s6 = int_to_ptr.hbm [resolvable:$true] %s40_s6 }
   0xb   :  { %s85_s20 = sshll.u32 %s2027_s1, 4  ;;  %s66_s24 = sshll.u32 %s2720_s7, 4  ;;  %s86_s20 = int_to_ptr.vmem [resolvable:$true] %s85_s20  ;;  %s67_s24 = int_to_ptr.hbm [resolvable:$true] %s66_s24 }
   0xc   :  { %91 = dma.hbm_to_vmem [thread:$0]  %s84_s30, 1024, %s86_s20, [#allocation13], %s2025_s18, %s2025_s18, %s2026_s19  }
   0xd   :  { %s2028_s25 = smov [#allocation7]   ;;  %s2029_s26 = smov [#allocation11]  }
   0xe   :  { %s42_s27 = sshll.u32 %s2028_s25, 4  ;;  %s68_s5 = sshll.u32 %s2029_s26, 4  ;;  %s43_s27 = int_to_ptr.vmem [resolvable:$true] %s42_s27  ;;  %s69_s5 = int_to_ptr.vmem [resolvable:$true] %s68_s5 }
   0xf   :  { %48 = dma.hbm_to_vmem [thread:$0]  %s41_s6, 512, %s43_s27, [#allocation8], %s2025_s18, %s2025_s18, %s2026_s19  }
  0x10   :  { %s96_s0 = sshll.u32 %s2724_s11, 4  ;;  %s111_s1 = sshll.u32 %s2726_s13, 4  ;;  %s97_s0 = int_to_ptr.hbm [resolvable:$true] %s96_s0  ;;  %s112_s1 = int_to_ptr.hbm [resolvable:$true] %s111_s1 }
  0x11   :  { %74 = dma.hbm_to_vmem [thread:$0]  %s67_s24, 512, %s69_s5, [#allocation10], %s2025_s18, %s2025_s18, %s2026_s19  }
  0x12   :  { %s2030_s20 = smov [#allocation14]   ;;  %s2031_s22 = smov [#allocation15]  }
  0x13   :  { %s98_s21 = sshll.u32 %s2030_s20, 4  ;;  %s113_s11 = sshll.u32 %s2031_s22, 4  ;;  %s99_s21 = int_to_ptr.vmem [resolvable:$true] %s98_s21  ;;  %s114_s11 = int_to_ptr.vmem [resolvable:$true] %s113_s11 }
  0x14   :  { %104 = dma.hbm_to_vmem [thread:$0]  %s97_s0, 1024, %s99_s21, [#allocation13], %s2025_s18, %s2025_s18, %s2026_s19  }
  0x15   :  { %119 = dma.hbm_to_vmem [thread:$0]  %s112_s1, 10240, %s114_s11, [#allocation16], %s2025_s18, %s2025_s18, %s2026_s19  }
  0x16   :  { %2016 = dma.done.wait [#allocation8], 512  }
  0x17   :  { %2017 = vsyncadd [#allocation8], 4294966784 }
  0x18   :  { %2018 = dma.done.wait [#allocation10], 1024  }
  0x19   :  { %2019 = vsyncadd [#allocation10], 4294966272 }
  0x1a   :  { %2020 = dma.done.wait [#allocation13], 2048  }
  0x1b   :  { %2021 = vsyncadd [#allocation13], 4294965248 }
  0x1c   :  { %2022 = dma.done.wait [#allocation16], 10240  }
  0x1d   :  { %2023 = vsyncadd [#allocation16], 4294957056  ;;  %vm233_vm0 = vcmask 1041408   ;;  %vm172_vm1 = vcmask 15360   ;;  %s2734_s10 = sld [smem:[#allocation22_spill]]  ;;  %v657_v4 = vld [vmem:[#allocation9 + $0x18] sm:$0xff] }
  0x1e   :  { %v313_v1 = vld [vmem:[%s2716_s3] sm:$0x3]  ;;  %s2735_s26 = sld [smem:[#allocation21_spill]]  ;;  %v801_v5 = vld [vmem:[#allocation11 + $0x18] sm:$0xff]  ;;  %v655_v14 = vld [vmem:[#allocation9 + $0x8] sm:$0xff]  ;;  %vm477_vm2 = vcmask 261120  }
  0x1f   :  { %v170_v2 = vld [vmem:[%s2715_s2] sm:$0x3]  ;;  %1727 = vmatpush.msk.msra.mxu1 %vm233_vm0, %v313_v1  ;;  %v799_v17 = vld [vmem:[#allocation11 + $0x8] sm:$0xff]  ;;  %v654_v21 = vld [vmem:[#allocation9] sm:$0xff]  ;;  %vm959_vm3 = vcmask 523264  }
  0x20   :  { %1748 = vmatpush.msk.msra.mxu2 %vm233_vm0, %v170_v2  ;;  %v656_v7 = vld [vmem:[#allocation9 + $0x10] sm:$0xff]  ;;  %v661_v25 = vld [vmem:[#allocation7 + $0x18] sm:$0xff]  ;;  %v659_v28 = vld [vmem:[#allocation7 + $0x8] sm:$0xff] }
  0x21   :  { %894 = vmatpush.msrb.mxu1 %v657_v4  ;;  %v800_v10 = vld [vmem:[#allocation11 + $0x10] sm:$0xff]  ;;  %734 = vmatpush.msra.mxu3 %v661_v25  ;;  %v658_v29 = vld [vmem:[#allocation7] sm:$0xff] }
  0x22   :  { %v660_v27 = vld [vmem:[#allocation7 + $0x10] sm:$0xff]  ;;  %v798_v33 = vld [vmem:[#allocation11] sm:$0xff] }
  0x23   :  { %v171_v0 = vld [vmem:[%s2734_s10] sm:$0x3]  ;;  %895 = vmatpush.msrb.mxu1 %v656_v7  ;;  %735 = vmatpush.msra.mxu3 %v660_v27 }
  0x24   :  { %1706 = vmatpush.msk.msra.mxu0 %vm233_vm0, %v171_v0  ;;  %v150_v3 = vld [vmem:[%s2735_s26] sm:$0xff]  ;;  %v151_v6 = vld [vmem:[%s2735_s26 + $0x8] sm:$0xff]  ;;  %v152_v8 = vld [vmem:[%s2735_s26 + $0x10] sm:$0xff] }
  0x25   :  { %1707 = vmatmul.msk.f32.vlgmr.msra.gmra.mxu0 %vm172_vm1, %v150_v3  ;;  %1728 = vmatmul.msk.f32.vlgmr.msra.gmra.mxu1 %vm172_vm1, %v150_v3  ;;  %v153_v9 = vld [vmem:[%s2735_s26 + $0x18] sm:$0xff]  ;;  %v154_v11 = vld [vmem:[%s2735_s26 + $0x20] sm:$0xff]  ;;  %v155_v12 = vld [vmem:[%s2735_s26 + $0x28] sm:$0xff] }
  0x26   :  { %1749 = vmatmul.msk.f32.vlgmr.msra.gmra.mxu2 %vm172_vm1, %v150_v3  ;;  %814 = vmatpush.msrb.mxu0 %v801_v5  ;;  %v156_v13 = vld [vmem:[%s2735_s26 + $0x30] sm:$0xff]  ;;  %v157_v15 = vld [vmem:[%s2735_s26 + $0x38] sm:$0xff]  ;;  %v158_v16 = vld [vmem:[%s2735_s26 + $0x40] sm:$0xff] }
  0x27   :  { %896 = vmatpush.msrb.mxu1 %v655_v14  ;;  %v159_v18 = vld [vmem:[%s2735_s26 + $0x48] sm:$0xff]  ;;  %v160_v19 = vld [vmem:[%s2735_s26 + $0x50] sm:$0xff]  ;;  %v161_v20 = vld [vmem:[%s2735_s26 + $0x58] sm:$0xff]  ;;  %736 = vmatpush.msra.mxu3 %v659_v28 }
  0x28   :  { %815 = vmatpush.msrb.mxu0 %v800_v10  ;;  %v162_v22 = vld [vmem:[%s2735_s26 + $0x60] sm:$0xff]  ;;  %v163_v23 = vld [vmem:[%s2735_s26 + $0x68] sm:$0xff]  ;;  %v164_v24 = vld [vmem:[%s2735_s26 + $0x70] sm:$0xff] }
  0x29   :  { %897 = vmatpush.msrb.mxu1 %v654_v21  ;;  %v165_v26 = vld [vmem:[%s2735_s26 + $0x78] sm:$0xff]  ;;  %737 = vmatpush.msra.mxu3 %v658_v29  ;;  %v166_v31 = vld [vmem:[%s2735_s26 + $0x80] sm:$0xff]  ;;  %v167_v38 = vld [vmem:[%s2735_s26 + $0x88] sm:$0xff] }
  0x2a   :  { %816 = vmatpush.msrb.mxu0 %v799_v17  ;;  %v2272_v34 = vld [vmem:[%s2717_s4] ss:$0 sm:$0xff]  ;;  %v168_v43 = vld [vmem:[%s2735_s26 + $0x90] sm:$0xff]  ;;  %v169_v51 = vld [vmem:[%s2735_s26 + $0x98] sm:$0xff] }
  0x2c   :  { %817 = vmatpush.msrb.mxu0 %v798_v33 }
  0x2d   :  { %1708 = vmatmul.msk.f32.gmra.mxu0 %vm172_vm1, %v151_v6  ;;  %1729 = vmatmul.msk.f32.gmra.mxu1 %vm172_vm1, %v151_v6 }
  0x2e   :  { %1750 = vmatmul.msk.f32.gmra.mxu2 %vm172_vm1, %v151_v6 }
  0x35   :  { %1709 = vmatmul.msk.f32.gmra.mxu0 %vm172_vm1, %v152_v8  ;;  %1730 = vmatmul.msk.f32.gmra.mxu1 %vm172_vm1, %v152_v8 }
  0x36   :  { %1751 = vmatmul.msk.f32.gmra.mxu2 %vm172_vm1, %v152_v8 }
  0x3d   :  { %1710 = vmatmul.msk.f32.gmra.mxu0 %vm172_vm1, %v153_v9  ;;  %1731 = vmatmul.msk.f32.gmra.mxu1 %vm172_vm1, %v153_v9 }
  0x3e   :  { %1752 = vmatmul.msk.f32.gmra.mxu2 %vm172_vm1, %v153_v9 }
  0x45   :  { %1711 = vmatmul.msk.f32.gmra.mxu0 %vm172_vm1, %v154_v11  ;;  %1732 = vmatmul.msk.f32.gmra.mxu1 %vm172_vm1, %v154_v11 }
  0x46   :  { %1753 = vmatmul.msk.f32.gmra.mxu2 %vm172_vm1, %v154_v11 }
  0x4d   :  { %1712 = vmatmul.msk.f32.gmra.mxu0 %vm172_vm1, %v155_v12  ;;  %1733 = vmatmul.msk.f32.gmra.mxu1 %vm172_vm1, %v155_v12 }
  0x4e   :  { %1754 = vmatmul.msk.f32.gmra.mxu2 %vm172_vm1, %v155_v12 }
  0x55   :  { %1713 = vmatmul.msk.f32.gmra.mxu0 %vm172_vm1, %v156_v13  ;;  %1734 = vmatmul.msk.f32.gmra.mxu1 %vm172_vm1, %v156_v13 }
  0x56   :  { %1755 = vmatmul.msk.f32.gmra.mxu2 %vm172_vm1, %v156_v13 }
  0x5d   :  { %1714 = vmatmul.msk.f32.gmra.mxu0 %vm172_vm1, %v157_v15  ;;  %1735 = vmatmul.msk.f32.gmra.mxu1 %vm172_vm1, %v157_v15 }
  0x5e   :  { %1756 = vmatmul.msk.f32.gmra.mxu2 %vm172_vm1, %v157_v15 }
  0x65   :  { %1715 = vmatmul.msk.f32.gmra.mxu0 %vm172_vm1, %v158_v16  ;;  %1736 = vmatmul.msk.f32.gmra.mxu1 %vm172_vm1, %v158_v16 }
  0x66   :  { %1757 = vmatmul.msk.f32.gmra.mxu2 %vm172_vm1, %v158_v16 }
  0x6d   :  { %1716 = vmatmul.msk.f32.gmra.mxu0 %vm172_vm1, %v159_v18  ;;  %1737 = vmatmul.msk.f32.gmra.mxu1 %vm172_vm1, %v159_v18 }
  0x6e   :  { %1758 = vmatmul.msk.f32.gmra.mxu2 %vm172_vm1, %v159_v18 }
  0x75   :  { %1717 = vmatmul.msk.f32.gmra.mxu0 %vm172_vm1, %v160_v19  ;;  %1738 = vmatmul.msk.f32.gmra.mxu1 %vm172_vm1, %v160_v19 }
  0x76   :  { %1759 = vmatmul.msk.f32.gmra.mxu2 %vm172_vm1, %v160_v19 }
  0x7d   :  { %1718 = vmatmul.msk.f32.gmra.mxu0 %vm172_vm1, %v161_v20  ;;  %1739 = vmatmul.msk.f32.gmra.mxu1 %vm172_vm1, %v161_v20 }
  0x7e   :  { %1760 = vmatmul.msk.f32.gmra.mxu2 %vm172_vm1, %v161_v20 }
  0x85   :  { %1719 = vmatmul.msk.f32.gmra.mxu0 %vm172_vm1, %v162_v22  ;;  %1740 = vmatmul.msk.f32.gmra.mxu1 %vm172_vm1, %v162_v22 }
  0x86   :  { %1761 = vmatmul.msk.f32.gmra.mxu2 %vm172_vm1, %v162_v22 }
  0x8d   :  { %1720 = vmatmul.msk.f32.gmra.mxu0 %vm172_vm1, %v163_v23  ;;  %1741 = vmatmul.msk.f32.gmra.mxu1 %vm172_vm1, %v163_v23 }
  0x8e   :  { %1762 = vmatmul.msk.f32.gmra.mxu2 %vm172_vm1, %v163_v23 }
  0x95   :  { %1721 = vmatmul.msk.f32.gmra.mxu0 %vm172_vm1, %v164_v24  ;;  %1742 = vmatmul.msk.f32.gmra.mxu1 %vm172_vm1, %v164_v24 }
  0x96   :  { %1763 = vmatmul.msk.f32.gmra.mxu2 %vm172_vm1, %v164_v24 }
  0x9d   :  { %1722 = vmatmul.msk.f32.gmra.mxu0 %vm172_vm1, %v165_v26  ;;  %1743 = vmatmul.msk.f32.gmra.mxu1 %vm172_vm1, %v165_v26 }
  0x9e   :  { %1764 = vmatmul.msk.f32.gmra.mxu2 %vm172_vm1, %v165_v26 }
  0xa2   :  { %v254_v30 = vpop.f32.mrf.mxu0  ;;  %v334_v32 = vpop.f32.mrf.mxu1 }
  0xa5   :  { %1723 = vmatmul.msk.f32.gmra.mxu0 %vm172_vm1, %v166_v31  ;;  %1744 = vmatmul.msk.f32.gmra.mxu1 %vm172_vm1, %v166_v31 }
  0xa6   :  { %1765 = vmatmul.msk.f32.gmra.mxu2 %vm172_vm1, %v166_v31 }
  0xa9   :  { %v417_v35 = vpop.f32.mrf.mxu2 }
  0xaa   :  { %v418_v36 = vadd.f32 %v2272_v34, %v417_v35  ;;  %v257_v37 = vpop.f32.mrf.mxu0  ;;  %v336_v39 = vpop.f32.mrf.mxu1 }
  0xac   :  { %478 = vst.msk [vmem:[#allocation2] sm:$0xff] %vm477_vm2, %v418_v36 }
  0xad   :  { %1724 = vmatmul.msk.f32.gmra.mxu0 %vm172_vm1, %v167_v38  ;;  %1745 = vmatmul.msk.f32.gmra.mxu1 %vm172_vm1, %v167_v38 }
  0xae   :  { %1766 = vmatmul.msk.f32.gmra.mxu2 %vm172_vm1, %v167_v38 }
  0xb1   :  { %v420_v40 = vpop.f32.mrf.mxu2 }
  0xb2   :  { %v421_v41 = vadd.f32 %v2272_v34, %v420_v40  ;;  %v260_v42 = vpop.f32.mrf.mxu0  ;;  %v339_v45 = vpop.f32.mrf.mxu1 }
  0xb3   :  { %v555_v44 = vld [vmem:[#allocation2] sm:$0xff] }
  0xb4   :  { %v574_v46 = vadd.f32 %v555_v44, %v336_v39  ;;  %479 = vst.msk [vmem:[#allocation2 + $0x8] sm:$0xff] %vm477_vm2, %v421_v41 }
  0xb5   :  { %1725 = vmatmul.msk.f32.gmra.mxu0 %vm172_vm1, %v168_v43  ;;  %1746 = vmatmul.msk.f32.gmra.mxu1 %vm172_vm1, %v168_v43 }
  0xb6   :  { %v593_v47 = vmax.f32 %v574_v46, 0.0  ;;  %1767 = vmatmul.msk.f32.gmra.mxu2 %vm172_vm1, %v168_v43 }
  0xb8   :  { %612 = vst.msk [vmem:[#allocation2] sm:$0xff] %vm477_vm2, %v593_v47 }
  0xb9   :  { %v423_v48 = vpop.f32.mrf.mxu2 }
  0xba   :  { %v424_v49 = vadd.f32 %v2272_v34, %v423_v48  ;;  %v263_v50 = vpop.f32.mrf.mxu0  ;;  %v342_v53 = vpop.f32.mrf.mxu1 }
  0xbb   :  { %v498_v52 = vld [vmem:[#allocation2 + $0x8] sm:$0xff] }
  0xbc   :  { %v517_v54 = vadd.f32 %v498_v52, %v254_v30  ;;  %480 = vst.msk [vmem:[#allocation2 + $0x10] sm:$0xff] %vm477_vm2, %v424_v49 }
  0xbd   :  { %1726 = vmatmul.msk.f32.gmra.mxu0 %vm172_vm1, %v169_v51  ;;  %1747 = vmatmul.msk.f32.gmra.mxu1 %vm172_vm1, %v169_v51 }
  0xbe   :  { %536 = vst.msk [vmem:[#allocation2 + $0x8] sm:$0xff] %vm477_vm2, %v517_v54  ;;  %1768 = vmatmul.msk.f32.gmra.mxu2 %vm172_vm1, %v169_v51 }
  0xbf   :  { %v634_v55 = vld [vmem:[#allocation2] sm:$0xff] }
  0xc0   :  { %1769 = vmatmul.msk.f32.vlgmr.msra.gmra.mxu3 %vm477_vm2, %v634_v55 }
  0xc1   :  { %v426_v56 = vpop.f32.mrf.mxu2 }
  0xc2   :  { %v427_v57 = vadd.f32 %v2272_v34, %v426_v56  ;;  %v266_v58 = vpop.f32.mrf.mxu0  ;;  %v345_v60 = vpop.f32.mrf.mxu1 }
  0xc3   :  { %v499_v59 = vld [vmem:[#allocation2 + $0x10] sm:$0xff] }
  0xc4   :  { %v518_v61 = vadd.f32 %v499_v59, %v257_v37  ;;  %481 = vst.msk [vmem:[#allocation2 + $0x18] sm:$0xff] %vm477_vm2, %v427_v57 }
  0xc5   :  { %v556_v62 = vld [vmem:[#allocation2 + $0x8] sm:$0xff]  ;;  %1789 = vmatmul.msk.f32.vlgmr.msrb.gmra.mxu0 %vm477_vm2, %v634_v55  ;;  %1809 = vmatmul.msk.f32.vlgmr.msrb.gmra.mxu1 %vm477_vm2, %v634_v55 }
  0xc6   :  { %v575_v63 = vadd.f32 %v556_v62, %v339_v45  ;;  %537 = vst.msk [vmem:[#allocation2 + $0x10] sm:$0xff] %vm477_vm2, %v518_v61 }
  0xc8   :  { %v594_v0 = vmax.f32 %v575_v63, 0.0 }
  0xc9   :  { %v429_v1 = vpop.f32.mrf.mxu2 }
  0xca   :  { %613 = vst.msk [vmem:[#allocation2 + $0x8] sm:$0xff] %vm477_vm2, %v594_v0  ;;  %v430_v2 = vadd.f32 %v2272_v34, %v429_v1  ;;  %v269_v3 = vpop.f32.mrf.mxu0  ;;  %v348_v5 = vpop.f32.mrf.mxu1 }
  0xcb   :  { %v500_v4 = vld [vmem:[#allocation2 + $0x18] sm:$0xff] }
  0xcc   :  { %v519_v6 = vadd.f32 %v500_v4, %v260_v42  ;;  %482 = vst.msk [vmem:[#allocation2 + $0x20] sm:$0xff] %vm477_vm2, %v430_v2 }
  0xcd   :  { %v557_v7 = vld [vmem:[#allocation2 + $0x10] sm:$0xff] }
  0xce   :  { %v576_v8 = vadd.f32 %v557_v7, %v342_v53  ;;  %538 = vst.msk [vmem:[#allocation2 + $0x18] sm:$0xff] %vm477_vm2, %v519_v6 }
  0xd0   :  { %v595_v9 = vmax.f32 %v576_v8, 0.0 }
  0xd1   :  { %v432_v10 = vpop.f32.mrf.mxu2  ;;  %v635_v11 = vld [vmem:[#allocation2 + $0x8] sm:$0xff] }
  0xd2   :  { %614 = vst.msk [vmem:[#allocation2 + $0x10] sm:$0xff] %vm477_vm2, %v595_v9  ;;  %v433_v12 = vadd.f32 %v2272_v34, %v432_v10  ;;  %1770 = vmatmul.msk.f32.gmra.mxu3 %vm477_vm2, %v635_v11  ;;  %1790 = vmatmul.msk.f32.gmra.mxu0 %vm477_vm2, %v635_v11  ;;  %v272_v13 = vpop.f32.mrf.mxu0  ;;  %v351_v15 = vpop.f32.mrf.mxu1 }
  0xd3   :  { %v501_v14 = vld [vmem:[#allocation2 + $0x20] sm:$0xff]  ;;  %1810 = vmatmul.msk.f32.gmra.mxu1 %vm477_vm2, %v635_v11 }
  0xd4   :  { %v520_v16 = vadd.f32 %v501_v14, %v263_v50  ;;  %483 = vst.msk [vmem:[#allocation2 + $0x28] sm:$0xff] %vm477_vm2, %v433_v12 }
  0xd5   :  { %v558_v17 = vld [vmem:[#allocation2 + $0x18] sm:$0xff] }
  0xd6   :  { %v577_v18 = vadd.f32 %v558_v17, %v345_v60  ;;  %539 = vst.msk [vmem:[#allocation2 + $0x20] sm:$0xff] %vm477_vm2, %v520_v16 }
  0xd8   :  { %v596_v19 = vmax.f32 %v577_v18, 0.0 }
  0xd9   :  { %v435_v20 = vpop.f32.mrf.mxu2  ;;  %v636_v21 = vld [vmem:[#allocation2 + $0x10] sm:$0xff] }
  0xda   :  { %615 = vst.msk [vmem:[#allocation2 + $0x18] sm:$0xff] %vm477_vm2, %v596_v19  ;;  %v436_v22 = vadd.f32 %v2272_v34, %v435_v20  ;;  %1771 = vmatmul.msk.f32.gmra.mxu3 %vm477_vm2, %v636_v21  ;;  %1791 = vmatmul.msk.f32.gmra.mxu0 %vm477_vm2, %v636_v21  ;;  %v275_v23 = vpop.f32.mrf.mxu0  ;;  %v354_v25 = vpop.f32.mrf.mxu1 }
  0xdb   :  { %v502_v24 = vld [vmem:[#allocation2 + $0x28] sm:$0xff]  ;;  %1811 = vmatmul.msk.f32.gmra.mxu1 %vm477_vm2, %v636_v21 }
  0xdc   :  { %v521_v26 = vadd.f32 %v502_v24, %v266_v58  ;;  %484 = vst.msk [vmem:[#allocation2 + $0x30] sm:$0xff] %vm477_vm2, %v436_v22 }
  0xdd   :  { %v559_v27 = vld [vmem:[#allocation2 + $0x20] sm:$0xff] }
  0xde   :  { %v578_v28 = vadd.f32 %v559_v27, %v348_v5  ;;  %540 = vst.msk [vmem:[#allocation2 + $0x28] sm:$0xff] %vm477_vm2, %v521_v26 }
  0xe0   :  { %v597_v29 = vmax.f32 %v578_v28, 0.0 }
  0xe1   :  { %v438_v30 = vpop.f32.mrf.mxu2  ;;  %v637_v31 = vld [vmem:[#allocation2 + $0x18] sm:$0xff] }
  0xe2   :  { %616 = vst.msk [vmem:[#allocation2 + $0x20] sm:$0xff] %vm477_vm2, %v597_v29  ;;  %v439_v32 = vadd.f32 %v2272_v34, %v438_v30  ;;  %1772 = vmatmul.msk.f32.gmra.mxu3 %vm477_vm2, %v637_v31  ;;  %1792 = vmatmul.msk.f32.gmra.mxu0 %vm477_vm2, %v637_v31  ;;  %v278_v33 = vpop.f32.mrf.mxu0  ;;  %v357_v36 = vpop.f32.mrf.mxu1 }
  0xe3   :  { %v503_v35 = vld [vmem:[#allocation2 + $0x30] sm:$0xff]  ;;  %1812 = vmatmul.msk.f32.gmra.mxu1 %vm477_vm2, %v637_v31  ;;  %v1181_v31 = vld [vmem:[%s2722_s9 + $0x38] sm:$0xff] }
  0xe4   :  { %v522_v37 = vadd.f32 %v503_v35, %v269_v3  ;;  %485 = vst.msk [vmem:[#allocation2 + $0x38] sm:$0xff] %vm477_vm2, %v439_v32  ;;  %1220 = vmatpush.msrb.mxu2 %v1181_v31 }
  0xe5   :  { %v560_v38 = vld [vmem:[#allocation2 + $0x28] sm:$0xff] }
  0xe6   :  { %v579_v39 = vadd.f32 %v560_v38, %v351_v15  ;;  %541 = vst.msk [vmem:[#allocation2 + $0x30] sm:$0xff] %vm477_vm2, %v522_v37 }
  0xe8   :  { %v598_v40 = vmax.f32 %v579_v39, 0.0 }
  0xe9   :  { %v441_v41 = vpop.f32.mrf.mxu2  ;;  %v638_v42 = vld [vmem:[#allocation2 + $0x20] sm:$0xff] }
  0xea   :  { %617 = vst.msk [vmem:[#allocation2 + $0x28] sm:$0xff] %vm477_vm2, %v598_v40  ;;  %v442_v43 = vadd.f32 %v2272_v34, %v441_v41  ;;  %1773 = vmatmul.msk.f32.gmra.mxu3 %vm477_vm2, %v638_v42  ;;  %1793 = vmatmul.msk.f32.gmra.mxu0 %vm477_vm2, %v638_v42  ;;  %v281_v44 = vpop.f32.mrf.mxu0  ;;  %v360_v46 = vpop.f32.mrf.mxu1 }
  0xeb   :  { %v504_v45 = vld [vmem:[#allocation2 + $0x38] sm:$0xff]  ;;  %1813 = vmatmul.msk.f32.gmra.mxu1 %vm477_vm2, %v638_v42 }
  0xec   :  { %v523_v47 = vadd.f32 %v504_v45, %v272_v13  ;;  %486 = vst.msk [vmem:[#allocation2 + $0x40] sm:$0xff] %vm477_vm2, %v442_v43 }
  0xed   :  { %v561_v48 = vld [vmem:[#allocation2 + $0x30] sm:$0xff] }
  0xee   :  { %v580_v49 = vadd.f32 %v561_v48, %v354_v25  ;;  %542 = vst.msk [vmem:[#allocation2 + $0x38] sm:$0xff] %vm477_vm2, %v523_v47 }
  0xf0   :  { %v599_v50 = vmax.f32 %v580_v49, 0.0 }
  0xf1   :  { %v444_v51 = vpop.f32.mrf.mxu2  ;;  %v639_v52 = vld [vmem:[#allocation2 + $0x28] sm:$0xff] }
  0xf2   :  { %618 = vst.msk [vmem:[#allocation2 + $0x30] sm:$0xff] %vm477_vm2, %v599_v50  ;;  %v445_v53 = vadd.f32 %v2272_v34, %v444_v51  ;;  %1774 = vmatmul.msk.f32.gmra.mxu3 %vm477_vm2, %v639_v52  ;;  %1794 = vmatmul.msk.f32.gmra.mxu0 %vm477_vm2, %v639_v52  ;;  %v284_v54 = vpop.f32.mrf.mxu0  ;;  %v363_v56 = vpop.f32.mrf.mxu1 }
  0xf3   :  { %v505_v55 = vld [vmem:[#allocation2 + $0x40] sm:$0xff]  ;;  %1814 = vmatmul.msk.f32.gmra.mxu1 %vm477_vm2, %v639_v52 }
  0xf4   :  { %v524_v57 = vadd.f32 %v505_v55, %v275_v23  ;;  %487 = vst.msk [vmem:[#allocation2 + $0x48] sm:$0xff] %vm477_vm2, %v445_v53 }
  0xf5   :  { %v562_v58 = vld [vmem:[#allocation2 + $0x38] sm:$0xff] }
  0xf6   :  { %v581_v59 = vadd.f32 %v562_v58, %v357_v36  ;;  %543 = vst.msk [vmem:[#allocation2 + $0x40] sm:$0xff] %vm477_vm2, %v524_v57 }
  0xf8   :  { %v600_v60 = vmax.f32 %v581_v59, 0.0 }
  0xf9   :  { %v447_v61 = vpop.f32.mrf.mxu2  ;;  %v640_v62 = vld [vmem:[#allocation2 + $0x30] sm:$0xff] }
  0xfa   :  { %619 = vst.msk [vmem:[#allocation2 + $0x38] sm:$0xff] %vm477_vm2, %v600_v60  ;;  %v448_v63 = vadd.f32 %v2272_v34, %v447_v61  ;;  %1775 = vmatmul.msk.f32.gmra.mxu3 %vm477_vm2, %v640_v62  ;;  %1795 = vmatmul.msk.f32.gmra.mxu0 %vm477_vm2, %v640_v62  ;;  %v287_v0 = vpop.f32.mrf.mxu0  ;;  %v366_v2 = vpop.f32.mrf.mxu1 }
  0xfb   :  { %v506_v1 = vld [vmem:[#allocation2 + $0x48] sm:$0xff]  ;;  %1815 = vmatmul.msk.f32.gmra.mxu1 %vm477_vm2, %v640_v62 }
  0xfc   :  { %v525_v3 = vadd.f32 %v506_v1, %v278_v33  ;;  %488 = vst.msk [vmem:[#allocation2 + $0x50] sm:$0xff] %vm477_vm2, %v448_v63  ;;  %v1180_v63 = vld [vmem:[%s2722_s9 + $0x30] sm:$0xff] }
  0xfd   :  { %v563_v4 = vld [vmem:[#allocation2 + $0x40] sm:$0xff]  ;;  %1221 = vmatpush.msrb.mxu2 %v1180_v63 }
  0xfe   :  { %v582_v5 = vadd.f32 %v563_v4, %v360_v46  ;;  %544 = vst.msk [vmem:[#allocation2 + $0x48] sm:$0xff] %vm477_vm2, %v525_v3  ;;  %v1260_v63 = vld [vmem:[#allocation14 + $0x10] sm:$0xff] }
 0x100   :  { %v601_v6 = vmax.f32 %v582_v5, 0.0 }
 0x101   :  { %v450_v7 = vpop.f32.mrf.mxu2  ;;  %v641_v8 = vld [vmem:[#allocation2 + $0x38] sm:$0xff] }
 0x102   :  { %620 = vst.msk [vmem:[#allocation2 + $0x40] sm:$0xff] %vm477_vm2, %v601_v6  ;;  %v451_v9 = vadd.f32 %v2272_v34, %v450_v7  ;;  %1776 = vmatmul.msk.f32.gmra.mxu3 %vm477_vm2, %v641_v8  ;;  %1796 = vmatmul.msk.f32.gmra.mxu0 %vm477_vm2, %v641_v8  ;;  %v290_v10 = vpop.f32.mrf.mxu0  ;;  %v369_v12 = vpop.f32.mrf.mxu1 }
 0x103   :  { %v507_v11 = vld [vmem:[#allocation2 + $0x50] sm:$0xff]  ;;  %1816 = vmatmul.msk.f32.gmra.mxu1 %vm477_vm2, %v641_v8 }
 0x104   :  { %v526_v13 = vadd.f32 %v507_v11, %v281_v44  ;;  %489 = vst.msk [vmem:[#allocation2 + $0x58] sm:$0xff] %vm477_vm2, %v451_v9 }
 0x105   :  { %v564_v14 = vld [vmem:[#allocation2 + $0x48] sm:$0xff] }
 0x106   :  { %v583_v15 = vadd.f32 %v564_v14, %v363_v56  ;;  %545 = vst.msk [vmem:[#allocation2 + $0x50] sm:$0xff] %vm477_vm2, %v526_v13 }
 0x108   :  { %v602_v16 = vmax.f32 %v583_v15, 0.0 }
 0x109   :  { %v453_v17 = vpop.f32.mrf.mxu2  ;;  %v642_v18 = vld [vmem:[#allocation2 + $0x40] sm:$0xff] }
 0x10a   :  { %621 = vst.msk [vmem:[#allocation2 + $0x48] sm:$0xff] %vm477_vm2, %v602_v16  ;;  %v454_v19 = vadd.f32 %v2272_v34, %v453_v17  ;;  %1777 = vmatmul.msk.f32.gmra.mxu3 %vm477_vm2, %v642_v18  ;;  %1797 = vmatmul.msk.f32.gmra.mxu0 %vm477_vm2, %v642_v18  ;;  %v293_v20 = vpop.f32.mrf.mxu0  ;;  %v372_v22 = vpop.f32.mrf.mxu1  ;;  %v1179_v16 = vld [vmem:[%s2722_s9 + $0x28] sm:$0xff] }
 0x10b   :  { %v508_v21 = vld [vmem:[#allocation2 + $0x58] sm:$0xff]  ;;  %1817 = vmatmul.msk.f32.gmra.mxu1 %vm477_vm2, %v642_v18  ;;  %1222 = vmatpush.msrb.mxu2 %v1179_v16 }
 0x10c   :  { %v527_v23 = vadd.f32 %v508_v21, %v284_v54  ;;  %490 = vst.msk [vmem:[#allocation2 + $0x60] sm:$0xff] %vm477_vm2, %v454_v19 }
 0x10d   :  { %v565_v24 = vld [vmem:[#allocation2 + $0x50] sm:$0xff] }
 0x10e   :  { %v584_v25 = vadd.f32 %v565_v24, %v366_v2  ;;  %546 = vst.msk [vmem:[#allocation2 + $0x58] sm:$0xff] %vm477_vm2, %v527_v23 }
 0x110   :  { %v603_v26 = vmax.f32 %v584_v25, 0.0 }
 0x111   :  { %v456_v27 = vpop.f32.mrf.mxu2  ;;  %v643_v28 = vld [vmem:[#allocation2 + $0x48] sm:$0xff] }
 0x112   :  { %622 = vst.msk [vmem:[#allocation2 + $0x50] sm:$0xff] %vm477_vm2, %v603_v26  ;;  %v457_v29 = vadd.f32 %v2272_v34, %v456_v27  ;;  %1778 = vmatmul.msk.f32.gmra.mxu3 %vm477_vm2, %v643_v28  ;;  %1798 = vmatmul.msk.f32.gmra.mxu0 %vm477_vm2, %v643_v28  ;;  %v296_v30 = vpop.f32.mrf.mxu0  ;;  %v375_v33 = vpop.f32.mrf.mxu1  ;;  %v2420_v27 = vld [vmem:[%s2721_s8] ss:$0 sm:$0xff] }
 0x113   :  { %v509_v32 = vld [vmem:[#allocation2 + $0x60] sm:$0xff]  ;;  %1818 = vmatmul.msk.f32.gmra.mxu1 %vm477_vm2, %v643_v28 }
 0x114   :  { %v528_v35 = vadd.f32 %v509_v32, %v287_v0  ;;  %491 = vst.msk [vmem:[#allocation2 + $0x68] sm:$0xff] %vm477_vm2, %v457_v29 }
 0x115   :  { %v566_v36 = vld [vmem:[#allocation2 + $0x58] sm:$0xff] }
 0x116   :  { %v585_v37 = vadd.f32 %v566_v36, %v369_v12  ;;  %547 = vst.msk [vmem:[#allocation2 + $0x60] sm:$0xff] %vm477_vm2, %v528_v35 }
 0x118   :  { %v604_v38 = vmax.f32 %v585_v37, 0.0 }
 0x119   :  { %v459_v39 = vpop.f32.mrf.mxu2  ;;  %v644_v40 = vld [vmem:[#allocation2 + $0x50] sm:$0xff] }
 0x11a   :  { %623 = vst.msk [vmem:[#allocation2 + $0x58] sm:$0xff] %vm477_vm2, %v604_v38  ;;  %v460_v41 = vadd.f32 %v2272_v34, %v459_v39  ;;  %1779 = vmatmul.msk.f32.gmra.mxu3 %vm477_vm2, %v644_v40  ;;  %1799 = vmatmul.msk.f32.gmra.mxu0 %vm477_vm2, %v644_v40  ;;  %v299_v42 = vpop.f32.mrf.mxu0  ;;  %v378_v44 = vpop.f32.mrf.mxu1 }
 0x11b   :  { %v510_v43 = vld [vmem:[#allocation2 + $0x68] sm:$0xff]  ;;  %1819 = vmatmul.msk.f32.gmra.mxu1 %vm477_vm2, %v644_v40 }
 0x11c   :  { %v529_v45 = vadd.f32 %v510_v43, %v290_v10  ;;  %492 = vst.msk [vmem:[#allocation2 + $0x70] sm:$0xff] %vm477_vm2, %v460_v41  ;;  %v1265_v41 = vld [vmem:[#allocation14 + $0x38] sm:$0xff] }
 0x11d   :  { %v567_v46 = vld [vmem:[#allocation2 + $0x60] sm:$0xff]  ;;  %1274 = vmatpush.msrb.mxu3 %v1265_v41 }
 0x11e   :  { %v586_v47 = vadd.f32 %v567_v46, %v372_v22  ;;  %548 = vst.msk [vmem:[#allocation2 + $0x68] sm:$0xff] %vm477_vm2, %v529_v45  ;;  %v1264_v45 = vld [vmem:[#allocation14 + $0x30] sm:$0xff] }
 0x11f   :  { %1275 = vmatpush.msrb.mxu3 %v1264_v45 }
 0x120   :  { %v605_v48 = vmax.f32 %v586_v47, 0.0 }
 0x121   :  { %v462_v49 = vpop.f32.mrf.mxu2  ;;  %v645_v50 = vld [vmem:[#allocation2 + $0x58] sm:$0xff] }
 0x122   :  { %624 = vst.msk [vmem:[#allocation2 + $0x60] sm:$0xff] %vm477_vm2, %v605_v48  ;;  %v463_v51 = vadd.f32 %v2272_v34, %v462_v49  ;;  %1780 = vmatmul.msk.f32.gmra.mxu3 %vm477_vm2, %v645_v50  ;;  %1800 = vmatmul.msk.f32.gmra.mxu0 %vm477_vm2, %v645_v50  ;;  %v302_v52 = vpop.f32.mrf.mxu0  ;;  %v381_v54 = vpop.f32.mrf.mxu1  ;;  %v1263_v49 = vld [vmem:[#allocation14 + $0x28] sm:$0xff] }
 0x123   :  { %v511_v53 = vld [vmem:[#allocation2 + $0x70] sm:$0xff]  ;;  %1820 = vmatmul.msk.f32.gmra.mxu1 %vm477_vm2, %v645_v50  ;;  %1276 = vmatpush.msrb.mxu3 %v1263_v49 }
 0x124   :  { %v530_v55 = vadd.f32 %v511_v53, %v293_v20  ;;  %493 = vst.msk [vmem:[#allocation2 + $0x78] sm:$0xff] %vm477_vm2, %v463_v51  ;;  %v1178_v53 = vld [vmem:[%s2722_s9 + $0x20] sm:$0xff] }
 0x125   :  { %v568_v56 = vld [vmem:[#allocation2 + $0x68] sm:$0xff]  ;;  %1223 = vmatpush.msrb.mxu2 %v1178_v53 }
 0x126   :  { %v587_v57 = vadd.f32 %v568_v56, %v375_v33  ;;  %549 = vst.msk [vmem:[#allocation2 + $0x70] sm:$0xff] %vm477_vm2, %v530_v55  ;;  %v1262_v56 = vld [vmem:[#allocation14 + $0x20] sm:$0xff] }
 0x127   :  { %1277 = vmatpush.msrb.mxu3 %v1262_v56 }
 0x128   :  { %v606_v58 = vmax.f32 %v587_v57, 0.0 }
 0x129   :  { %v465_v59 = vpop.f32.mrf.mxu2  ;;  %v646_v60 = vld [vmem:[#allocation2 + $0x60] sm:$0xff] }
 0x12a   :  { %625 = vst.msk [vmem:[#allocation2 + $0x68] sm:$0xff] %vm477_vm2, %v606_v58  ;;  %v466_v61 = vadd.f32 %v2272_v34, %v465_v59  ;;  %1781 = vmatmul.msk.f32.gmra.mxu3 %vm477_vm2, %v646_v60  ;;  %1801 = vmatmul.msk.f32.gmra.mxu0 %vm477_vm2, %v646_v60  ;;  %v305_v62 = vpop.f32.mrf.mxu0  ;;  %v384_v1 = vpop.f32.mrf.mxu1  ;;  %v1177_v58 = vld [vmem:[%s2722_s9 + $0x18] sm:$0xff]  ;;  %v1261_v59 = vld [vmem:[#allocation14 + $0x18] sm:$0xff] }
 0x12b   :  { %v512_v0 = vld [vmem:[#allocation2 + $0x78] sm:$0xff]  ;;  %1821 = vmatmul.msk.f32.gmra.mxu1 %vm477_vm2, %v646_v60  ;;  %1224 = vmatpush.msrb.mxu2 %v1177_v58 }
 0x12c   :  { %v531_v2 = vadd.f32 %v512_v0, %v296_v30  ;;  %494 = vst.msk [vmem:[#allocation2 + $0x80] sm:$0xff] %vm477_vm2, %v466_v61  ;;  %1278 = vmatpush.msrb.mxu3 %v1261_v59 }
 0x12d   :  { %v569_v3 = vld [vmem:[#allocation2 + $0x70] sm:$0xff] }
 0x12e   :  { %v588_v4 = vadd.f32 %v569_v3, %v378_v44  ;;  %550 = vst.msk [vmem:[#allocation2 + $0x78] sm:$0xff] %vm477_vm2, %v531_v2  ;;  %1279 = vmatpush.msrb.mxu3 %v1260_v63  ;;  %v1175_v2 = vld [vmem:[%s2722_s9 + $0x8] sm:$0xff]  ;;  %v1259_v3 = vld [vmem:[#allocation14 + $0x8] sm:$0xff] }
 0x130   :  { %v607_v5 = vmax.f32 %v588_v4, 0.0  ;;  %1280 = vmatpush.msrb.mxu3 %v1259_v3 }
 0x131   :  { %v468_v6 = vpop.f32.mrf.mxu2  ;;  %v647_v7 = vld [vmem:[#allocation2 + $0x68] sm:$0xff] }
 0x132   :  { %626 = vst.msk [vmem:[#allocation2 + $0x70] sm:$0xff] %vm477_vm2, %v607_v5  ;;  %v469_v8 = vadd.f32 %v2272_v34, %v468_v6  ;;  %1782 = vmatmul.msk.f32.gmra.mxu3 %vm477_vm2, %v647_v7  ;;  %1802 = vmatmul.msk.f32.gmra.mxu0 %vm477_vm2, %v647_v7  ;;  %v308_v9 = vpop.f32.mrf.mxu0  ;;  %v387_v11 = vpop.f32.mrf.mxu1 }
 0x133   :  { %v513_v10 = vld [vmem:[#allocation2 + $0x80] sm:$0xff]  ;;  %1822 = vmatmul.msk.f32.gmra.mxu1 %vm477_vm2, %v647_v7 }
 0x134   :  { %v532_v12 = vadd.f32 %v513_v10, %v299_v42  ;;  %495 = vst.msk [vmem:[#allocation2 + $0x88] sm:$0xff] %vm477_vm2, %v469_v8  ;;  %v1174_v7 = vld [vmem:[%s2722_s9] sm:$0xff]  ;;  %v1258_v8 = vld [vmem:[#allocation14] sm:$0xff] }
 0x135   :  { %v570_v13 = vld [vmem:[#allocation2 + $0x78] sm:$0xff]  ;;  %1281 = vmatpush.msrb.mxu3 %v1258_v8 }
 0x136   :  { %v589_v14 = vadd.f32 %v570_v13, %v381_v54  ;;  %551 = vst.msk [vmem:[#allocation2 + $0x80] sm:$0xff] %vm477_vm2, %v532_v12 }
 0x138   :  { %v608_v15 = vmax.f32 %v589_v14, 0.0 }
 0x139   :  { %v471_v17 = vpop.f32.mrf.mxu2  ;;  %v648_v18 = vld [vmem:[#allocation2 + $0x70] sm:$0xff] }
 0x13a   :  { %627 = vst.msk [vmem:[#allocation2 + $0x78] sm:$0xff] %vm477_vm2, %v608_v15  ;;  %v472_v19 = vadd.f32 %v2272_v34, %v471_v17  ;;  %1783 = vmatmul.msk.f32.gmra.mxu3 %vm477_vm2, %v648_v18  ;;  %1803 = vmatmul.msk.f32.gmra.mxu0 %vm477_vm2, %v648_v18  ;;  %v311_v20 = vpop.f32.mrf.mxu0  ;;  %v390_v22 = vpop.f32.mrf.mxu1 }
 0x13b   :  { %v514_v21 = vld [vmem:[#allocation2 + $0x88] sm:$0xff]  ;;  %1823 = vmatmul.msk.f32.gmra.mxu1 %vm477_vm2, %v648_v18 }
 0x13c   :  { %v533_v23 = vadd.f32 %v514_v21, %v302_v52  ;;  %496 = vst.msk [vmem:[#allocation2 + $0x90] sm:$0xff] %vm477_vm2, %v472_v19 }
 0x13d   :  { %v571_v24 = vld [vmem:[#allocation2 + $0x80] sm:$0xff] }
 0x13e   :  { %v590_v25 = vadd.f32 %v571_v24, %v384_v1  ;;  %552 = vst.msk [vmem:[#allocation2 + $0x88] sm:$0xff] %vm477_vm2, %v533_v23 }
 0x140   :  { %v609_v26 = vmax.f32 %v590_v25, 0.0 }
 0x141   :  { %v474_v28 = vpop.f32.mrf.mxu2  ;;  %v649_v29 = vld [vmem:[#allocation2 + $0x78] sm:$0xff] }
 0x142   :  { %628 = vst.msk [vmem:[#allocation2 + $0x80] sm:$0xff] %vm477_vm2, %v609_v26  ;;  %v475_v30 = vadd.f32 %v2272_v34, %v474_v28  ;;  %1784 = vmatmul.msk.f32.gmra.mxu3 %vm477_vm2, %v649_v29  ;;  %1804 = vmatmul.msk.f32.gmra.mxu0 %vm477_vm2, %v649_v29  ;;  %v819_v31 = vpop.f32.mrf.mxu0  ;;  %v899_v33 = vpop.f32.mrf.mxu1 }
 0x143   :  { %v515_v32 = vld [vmem:[#allocation2 + $0x90] sm:$0xff]  ;;  %1824 = vmatmul.msk.f32.gmra.mxu1 %vm477_vm2, %v649_v29  ;;  %v900_v36 = vadd.f32 %v2420_v27, %v899_v33  ;;  %v739_v44 = vpop.f32.mrf.mxu3 }
 0x144   :  { %v534_v35 = vadd.f32 %v515_v32, %v305_v62  ;;  %497 = vst.msk [vmem:[#allocation2 + $0x98] sm:$0xff] %vm477_vm2, %v475_v30  ;;  %v1176_v62 = vld [vmem:[%s2722_s9 + $0x10] sm:$0xff] }
 0x145   :  { %v572_v37 = vld [vmem:[#allocation2 + $0x88] sm:$0xff]  ;;  %960 = vst.msk [vmem:[#allocation3] sm:$0xff] %vm959_vm3, %v900_v36  ;;  %1225 = vmatpush.msrb.mxu2 %v1176_v62 }
 0x146   :  { %v591_v38 = vadd.f32 %v572_v37, %v387_v11  ;;  %553 = vst.msk [vmem:[#allocation2 + $0x90] sm:$0xff] %vm477_vm2, %v534_v35 }
 0x147   :  { %1226 = vmatpush.msrb.mxu2 %v1175_v2 }
 0x148   :  { %v610_v34 = vmax.f32 %v591_v38, 0.0 }
 0x149   :  { %v650_v39 = vld [vmem:[#allocation2 + $0x80] sm:$0xff]  ;;  %1227 = vmatpush.msrb.mxu2 %v1174_v7 }
 0x14a   :  { %629 = vst.msk [vmem:[#allocation2 + $0x88] sm:$0xff] %vm477_vm2, %v610_v34  ;;  %1785 = vmatmul.msk.f32.gmra.mxu3 %vm477_vm2, %v650_v39  ;;  %1805 = vmatmul.msk.f32.gmra.mxu0 %vm477_vm2, %v650_v39 }
 0x14b   :  { %v516_v40 = vld [vmem:[#allocation2 + $0x98] sm:$0xff]  ;;  %1825 = vmatmul.msk.f32.gmra.mxu1 %vm477_vm2, %v650_v39 }
 0x14c   :  { %v535_v42 = vadd.f32 %v516_v40, %v308_v9  ;;  %v1037_v48 = vld [vmem:[#allocation3] sm:$0xff] }
 0x14d   :  { %v573_v43 = vld [vmem:[#allocation2 + $0x90] sm:$0xff] }
 0x14e   :  { %v592_v46 = vadd.f32 %v573_v43, %v390_v22  ;;  %554 = vst.msk [vmem:[#allocation2 + $0x98] sm:$0xff] %vm477_vm2, %v535_v42 }
 0x14f   :  { %v821_v47 = vpop.f32.mrf.mxu0 }
 0x150   :  { %v611_v50 = vmax.f32 %v592_v46, 0.0  ;;  %v1056_v51 = vadd.f32 %v1037_v48, %v821_v47  ;;  %v902_v52 = vpop.f32.mrf.mxu1 }
 0x151   :  { %v903_v54 = vadd.f32 %v2420_v27, %v902_v52  ;;  %v651_v55 = vld [vmem:[#allocation2 + $0x88] sm:$0xff] }
 0x152   :  { %630 = vst.msk [vmem:[#allocation2 + $0x90] sm:$0xff] %vm477_vm2, %v611_v50  ;;  %v1075_v57 = vmax.f32 %v1056_v51, 0.0  ;;  %1786 = vmatmul.msk.f32.gmra.mxu3 %vm477_vm2, %v651_v55  ;;  %1806 = vmatmul.msk.f32.gmra.mxu0 %vm477_vm2, %v651_v55 }
 0x153   :  { %961 = vst.msk [vmem:[#allocation3 + $0x8] sm:$0xff] %vm959_vm3, %v903_v54  ;;  %1826 = vmatmul.msk.f32.gmra.mxu1 %vm477_vm2, %v651_v55 }
 0x154   :  { %1094 = vst.msk [vmem:[#allocation3] sm:$0xff] %vm959_vm3, %v1075_v57 }
 0x155   :  { %v631_v60 = vld [vmem:[#allocation2 + $0x98] sm:$0xff]  ;;  %v742_v61 = vpop.f32.mrf.mxu3 }
 0x156   :  { %v632_v0 = vmax.f32 %v631_v60, 0.0 }
 0x157   :  { %v824_v1 = vpop.f32.mrf.mxu0 }
 0x158   :  { %633 = vst.msk [vmem:[#allocation2 + $0x98] sm:$0xff] %vm477_vm2, %v632_v0  ;;  %v905_v4 = vpop.f32.mrf.mxu1 }
 0x159   :  { %v906_v5 = vadd.f32 %v2420_v27, %v905_v4  ;;  %v652_v6 = vld [vmem:[#allocation2 + $0x90] sm:$0xff] }
 0x15a   :  { %v980_v9 = vld [vmem:[#allocation3 + $0x8] sm:$0xff]  ;;  %1787 = vmatmul.msk.f32.gmra.mxu3 %vm477_vm2, %v652_v6  ;;  %1807 = vmatmul.msk.f32.gmra.mxu0 %vm477_vm2, %v652_v6 }
 0x15b   :  { %v999_v10 = vadd.f32 %v980_v9, %v739_v44  ;;  %962 = vst.msk [vmem:[#allocation3 + $0x10] sm:$0xff] %vm959_vm3, %v906_v5  ;;  %1827 = vmatmul.msk.f32.gmra.mxu1 %vm477_vm2, %v652_v6  ;;  %v1116_v33 = vld [vmem:[#allocation3] sm:$0xff] }
 0x15d   :  { %1018 = vst.msk [vmem:[#allocation3 + $0x8] sm:$0xff] %vm959_vm3, %v999_v10  ;;  %v745_v11 = vpop.f32.mrf.mxu3 }
 0x15f   :  { %v827_v12 = vpop.f32.mrf.mxu0  ;;  %v653_v15 = vld [vmem:[#allocation2 + $0x98] sm:$0xff] }
 0x160   :  { %v908_v13 = vpop.f32.mrf.mxu1 }
 0x161   :  { %v909_v14 = vadd.f32 %v2420_v27, %v908_v13 }
 0x162   :  { %v981_v16 = vld [vmem:[#allocation3 + $0x10] sm:$0xff]  ;;  %1788 = vmatmul.msk.f32.gmra.mxu3 %vm477_vm2, %v653_v15  ;;  %1808 = vmatmul.msk.f32.gmra.mxu0 %vm477_vm2, %v653_v15 }
 0x163   :  { %v1000_v17 = vadd.f32 %v981_v16, %v742_v61  ;;  %963 = vst.msk [vmem:[#allocation3 + $0x18] sm:$0xff] %vm959_vm3, %v909_v14  ;;  %1828 = vmatmul.msk.f32.gmra.mxu1 %vm477_vm2, %v653_v15 }
 0x164   :  { %v1038_v18 = vld [vmem:[#allocation3 + $0x8] sm:$0xff] }
 0x165   :  { %v1057_v19 = vadd.f32 %v1038_v18, %v824_v1  ;;  %1019 = vst.msk [vmem:[#allocation3 + $0x10] sm:$0xff] %vm959_vm3, %v1000_v17  ;;  %v748_v20 = vpop.f32.mrf.mxu3 }
 0x167   :  { %v1076_v21 = vmax.f32 %v1057_v19, 0.0  ;;  %v830_v22 = vpop.f32.mrf.mxu0 }
 0x168   :  { %v911_v23 = vpop.f32.mrf.mxu1 }
 0x169   :  { %1095 = vst.msk [vmem:[#allocation3 + $0x8] sm:$0xff] %vm959_vm3, %v1076_v21  ;;  %v912_v24 = vadd.f32 %v2420_v27, %v911_v23 }
 0x16a   :  { %v982_v25 = vld [vmem:[#allocation3 + $0x18] sm:$0xff] }
 0x16b   :  { %v1001_v26 = vadd.f32 %v982_v25, %v745_v11  ;;  %964 = vst.msk [vmem:[#allocation3 + $0x20] sm:$0xff] %vm959_vm3, %v912_v24 }
 0x16c   :  { %v1039_v28 = vld [vmem:[#allocation3 + $0x10] sm:$0xff] }
 0x16d   :  { %v1058_v29 = vadd.f32 %v1039_v28, %v827_v12  ;;  %1020 = vst.msk [vmem:[#allocation3 + $0x18] sm:$0xff] %vm959_vm3, %v1001_v26  ;;  %v751_v30 = vpop.f32.mrf.mxu3 }
 0x16f   :  { %v1077_v31 = vmax.f32 %v1058_v29, 0.0  ;;  %v833_v32 = vpop.f32.mrf.mxu0 }
 0x170   :  { %v1117_v35 = vld [vmem:[#allocation3 + $0x8] sm:$0xff]  ;;  %v914_v36 = vpop.f32.mrf.mxu1 }
 0x171   :  { %1096 = vst.msk [vmem:[#allocation3 + $0x10] sm:$0xff] %vm959_vm3, %v1077_v31  ;;  %v915_v37 = vadd.f32 %v2420_v27, %v914_v36  ;;  %v1118_v38 = vmax.f32 %v1116_v33, %v1117_v35 }
 0x172   :  { %v983_v34 = vld [vmem:[#allocation3 + $0x20] sm:$0xff] }
 0x173   :  { %v1002_v39 = vadd.f32 %v983_v34, %v748_v20  ;;  %965 = vst.msk [vmem:[#allocation3 + $0x28] sm:$0xff] %vm959_vm3, %v915_v37 }
 0x174   :  { %v1040_v40 = vld [vmem:[#allocation3 + $0x18] sm:$0xff]  ;;  %1119 = vst.msk [vmem:[#allocation4] sm:$0xff] %vm959_vm3, %v1118_v38 }
 0x175   :  { %v1059_v41 = vadd.f32 %v1040_v40, %v830_v22  ;;  %1021 = vst.msk [vmem:[#allocation3 + $0x20] sm:$0xff] %vm959_vm3, %v1002_v39  ;;  %v754_v42 = vpop.f32.mrf.mxu3 }
 0x177   :  { %v1078_v43 = vmax.f32 %v1059_v41, 0.0  ;;  %v836_v44 = vpop.f32.mrf.mxu0 }
 0x178   :  { %v917_v45 = vpop.f32.mrf.mxu1  ;;  %v1120_v56 = vld [vmem:[#allocation3 + $0x10] sm:$0xff] }
 0x179   :  { %1097 = vst.msk [vmem:[#allocation3 + $0x18] sm:$0xff] %vm959_vm3, %v1078_v43  ;;  %v918_v46 = vadd.f32 %v2420_v27, %v917_v45 }
 0x17a   :  { %v984_v47 = vld [vmem:[#allocation3 + $0x28] sm:$0xff] }
 0x17b   :  { %v1003_v48 = vadd.f32 %v984_v47, %v751_v30  ;;  %966 = vst.msk [vmem:[#allocation3 + $0x30] sm:$0xff] %vm959_vm3, %v918_v46  ;;  %v2483_v49 = vld [vmem:[#allocation4] sm:$0xff] }
 0x17c   :  { %v1041_v50 = vld [vmem:[#allocation3 + $0x20] sm:$0xff]  ;;  %1829 = vmatmul.msk.f32.vlgmr.msrb.gmra.mxu2 %vm959_vm3, %v2483_v49  ;;  %1839 = vmatmul.msk.f32.vlgmr.msrb.gmra.mxu3 %vm959_vm3, %v2483_v49 }
 0x17d   :  { %v1060_v51 = vadd.f32 %v1041_v50, %v833_v32  ;;  %1022 = vst.msk [vmem:[#allocation3 + $0x28] sm:$0xff] %vm959_vm3, %v1003_v48  ;;  %v757_v52 = vpop.f32.mrf.mxu3 }
 0x17f   :  { %v1079_v53 = vmax.f32 %v1060_v51, 0.0  ;;  %v839_v54 = vpop.f32.mrf.mxu0 }
 0x180   :  { %v920_v55 = vpop.f32.mrf.mxu1  ;;  %v1121_v57 = vld [vmem:[#allocation3 + $0x18] sm:$0xff] }
 0x181   :  { %1098 = vst.msk [vmem:[#allocation3 + $0x20] sm:$0xff] %vm959_vm3, %v1079_v53  ;;  %v921_v58 = vadd.f32 %v2420_v27, %v920_v55  ;;  %v1122_v59 = vmax.f32 %v1120_v56, %v1121_v57 }
 0x182   :  { %v985_v60 = vld [vmem:[#allocation3 + $0x30] sm:$0xff] }
 0x183   :  { %v1004_v61 = vadd.f32 %v985_v60, %v754_v42  ;;  %967 = vst.msk [vmem:[#allocation3 + $0x38] sm:$0xff] %vm959_vm3, %v921_v58 }
 0x184   :  { %v1042_v62 = vld [vmem:[#allocation3 + $0x28] sm:$0xff]  ;;  %1123 = vst.msk [vmem:[#allocation4 + $0x8] sm:$0xff] %vm959_vm3, %v1122_v59 }
 0x185   :  { %v1061_v63 = vadd.f32 %v1042_v62, %v836_v44  ;;  %1023 = vst.msk [vmem:[#allocation3 + $0x30] sm:$0xff] %vm959_vm3, %v1004_v61  ;;  %v760_v0 = vpop.f32.mrf.mxu3 }
 0x187   :  { %v1080_v1 = vmax.f32 %v1061_v63, 0.0  ;;  %v842_v2 = vpop.f32.mrf.mxu0 }
 0x188   :  { %v923_v3 = vpop.f32.mrf.mxu1  ;;  %v1124_v14 = vld [vmem:[#allocation3 + $0x20] sm:$0xff] }
 0x189   :  { %1099 = vst.msk [vmem:[#allocation3 + $0x28] sm:$0xff] %vm959_vm3, %v1080_v1  ;;  %v924_v4 = vadd.f32 %v2420_v27, %v923_v3 }
 0x18a   :  { %v986_v5 = vld [vmem:[#allocation3 + $0x38] sm:$0xff] }
 0x18b   :  { %v1005_v6 = vadd.f32 %v986_v5, %v757_v52  ;;  %968 = vst.msk [vmem:[#allocation3 + $0x40] sm:$0xff] %vm959_vm3, %v924_v4  ;;  %v2498_v7 = vld [vmem:[#allocation4 + $0x8] sm:$0xff] }
 0x18c   :  { %v1043_v8 = vld [vmem:[#allocation3 + $0x30] sm:$0xff]  ;;  %1830 = vmatmul.msk.f32.gmra.mxu2 %vm959_vm3, %v2498_v7  ;;  %1840 = vmatmul.msk.f32.gmra.mxu3 %vm959_vm3, %v2498_v7 }
 0x18d   :  { %v1062_v9 = vadd.f32 %v1043_v8, %v839_v54  ;;  %1024 = vst.msk [vmem:[#allocation3 + $0x38] sm:$0xff] %vm959_vm3, %v1005_v6  ;;  %v763_v10 = vpop.f32.mrf.mxu3  ;;  %v1173_v8 = vld [vmem:[#allocation12 + $0x38] sm:$0xff] }
 0x18e   :  { %1324 = vmatpush.msra.mxu2 %v1173_v8  ;;  %v1166_v8 = vld [vmem:[#allocation12] sm:$0xff] }
 0x18f   :  { %v1081_v11 = vmax.f32 %v1062_v9, 0.0  ;;  %v845_v12 = vpop.f32.mrf.mxu0 }
 0x190   :  { %v926_v13 = vpop.f32.mrf.mxu1  ;;  %v1125_v15 = vld [vmem:[#allocation3 + $0x28] sm:$0xff] }
 0x191   :  { %1100 = vst.msk [vmem:[#allocation3 + $0x30] sm:$0xff] %vm959_vm3, %v1081_v11  ;;  %v927_v16 = vadd.f32 %v2420_v27, %v926_v13  ;;  %v1126_v17 = vmax.f32 %v1124_v14, %v1125_v15 }
 0x192   :  { %v987_v18 = vld [vmem:[#allocation3 + $0x40] sm:$0xff] }
 0x193   :  { %v1006_v19 = vadd.f32 %v987_v18, %v760_v0  ;;  %969 = vst.msk [vmem:[#allocation3 + $0x48] sm:$0xff] %vm959_vm3, %v927_v16 }
 0x194   :  { %v1044_v20 = vld [vmem:[#allocation3 + $0x38] sm:$0xff]  ;;  %1127 = vst.msk [vmem:[#allocation4 + $0x10] sm:$0xff] %vm959_vm3, %v1126_v17 }
 0x195   :  { %v1063_v21 = vadd.f32 %v1044_v20, %v842_v2  ;;  %1025 = vst.msk [vmem:[#allocation3 + $0x40] sm:$0xff] %vm959_vm3, %v1006_v19  ;;  %v766_v22 = vpop.f32.mrf.mxu3 }
 0x197   :  { %v1082_v23 = vmax.f32 %v1063_v21, 0.0  ;;  %v848_v24 = vpop.f32.mrf.mxu0  ;;  %v1172_v21 = vld [vmem:[#allocation12 + $0x30] sm:$0xff] }
 0x198   :  { %v929_v25 = vpop.f32.mrf.mxu1  ;;  %v1128_v38 = vld [vmem:[#allocation3 + $0x30] sm:$0xff]  ;;  %1325 = vmatpush.msra.mxu2 %v1172_v21 }
 0x199   :  { %1101 = vst.msk [vmem:[#allocation3 + $0x38] sm:$0xff] %vm959_vm3, %v1082_v23  ;;  %v930_v26 = vadd.f32 %v2420_v27, %v929_v25 }
 0x19a   :  { %v988_v28 = vld [vmem:[#allocation3 + $0x48] sm:$0xff] }
 0x19b   :  { %v1007_v29 = vadd.f32 %v988_v28, %v763_v10  ;;  %970 = vst.msk [vmem:[#allocation3 + $0x50] sm:$0xff] %vm959_vm3, %v930_v26  ;;  %v2513_v30 = vld [vmem:[#allocation4 + $0x10] sm:$0xff] }
 0x19c   :  { %v1045_v31 = vld [vmem:[#allocation3 + $0x40] sm:$0xff]  ;;  %1831 = vmatmul.msk.f32.gmra.mxu2 %vm959_vm3, %v2513_v30  ;;  %1841 = vmatmul.msk.f32.gmra.mxu3 %vm959_vm3, %v2513_v30 }
 0x19d   :  { %v1064_v32 = vadd.f32 %v1045_v31, %v845_v12  ;;  %1026 = vst.msk [vmem:[#allocation3 + $0x48] sm:$0xff] %vm959_vm3, %v1007_v29  ;;  %v769_v33 = vpop.f32.mrf.mxu3 }
 0x19f   :  { %v1083_v35 = vmax.f32 %v1064_v32, 0.0  ;;  %v851_v36 = vpop.f32.mrf.mxu0 }
 0x1a0   :  { %v932_v37 = vpop.f32.mrf.mxu1  ;;  %v1129_v34 = vld [vmem:[#allocation3 + $0x38] sm:$0xff] }
 0x1a1   :  { %1102 = vst.msk [vmem:[#allocation3 + $0x40] sm:$0xff] %vm959_vm3, %v1083_v35  ;;  %v933_v39 = vadd.f32 %v2420_v27, %v932_v37  ;;  %v1130_v40 = vmax.f32 %v1128_v38, %v1129_v34  ;;  %v1171_v35 = vld [vmem:[#allocation12 + $0x28] sm:$0xff] }
 0x1a2   :  { %v989_v41 = vld [vmem:[#allocation3 + $0x50] sm:$0xff]  ;;  %1326 = vmatpush.msra.mxu2 %v1171_v35 }
 0x1a3   :  { %v1008_v42 = vadd.f32 %v989_v41, %v766_v22  ;;  %971 = vst.msk [vmem:[#allocation3 + $0x58] sm:$0xff] %vm959_vm3, %v933_v39 }
 0x1a4   :  { %v1046_v43 = vld [vmem:[#allocation3 + $0x48] sm:$0xff]  ;;  %1131 = vst.msk [vmem:[#allocation4 + $0x18] sm:$0xff] %vm959_vm3, %v1130_v40 }
 0x1a5   :  { %v1065_v44 = vadd.f32 %v1046_v43, %v848_v24  ;;  %1027 = vst.msk [vmem:[#allocation3 + $0x50] sm:$0xff] %vm959_vm3, %v1008_v42  ;;  %v772_v45 = vpop.f32.mrf.mxu3 }
 0x1a7   :  { %v1084_v46 = vmax.f32 %v1065_v44, 0.0  ;;  %v854_v47 = vpop.f32.mrf.mxu0 }
 0x1a8   :  { %v935_v48 = vpop.f32.mrf.mxu1  ;;  %v1132_v58 = vld [vmem:[#allocation3 + $0x40] sm:$0xff] }
 0x1a9   :  { %1103 = vst.msk [vmem:[#allocation3 + $0x48] sm:$0xff] %vm959_vm3, %v1084_v46  ;;  %v936_v50 = vadd.f32 %v2420_v27, %v935_v48 }
 0x1aa   :  { %v990_v51 = vld [vmem:[#allocation3 + $0x58] sm:$0xff] }
 0x1ab   :  { %v1009_v52 = vadd.f32 %v990_v51, %v769_v33  ;;  %972 = vst.msk [vmem:[#allocation3 + $0x60] sm:$0xff] %vm959_vm3, %v936_v50  ;;  %v2528_v53 = vld [vmem:[#allocation4 + $0x18] sm:$0xff] }
 0x1ac   :  { %v1047_v54 = vld [vmem:[#allocation3 + $0x50] sm:$0xff]  ;;  %1832 = vmatmul.msk.f32.gmra.mxu2 %vm959_vm3, %v2528_v53  ;;  %1842 = vmatmul.msk.f32.gmra.mxu3 %vm959_vm3, %v2528_v53 }
 0x1ad   :  { %v1066_v55 = vadd.f32 %v1047_v54, %v851_v36  ;;  %1028 = vst.msk [vmem:[#allocation3 + $0x58] sm:$0xff] %vm959_vm3, %v1009_v52  ;;  %v775_v56 = vpop.f32.mrf.mxu3 }
 0x1af   :  { %v1085_v57 = vmax.f32 %v1066_v55, 0.0  ;;  %v857_v60 = vpop.f32.mrf.mxu0 }
 0x1b0   :  { %v1133_v59 = vld [vmem:[#allocation3 + $0x48] sm:$0xff]  ;;  %v938_v61 = vpop.f32.mrf.mxu1 }
 0x1b1   :  { %1104 = vst.msk [vmem:[#allocation3 + $0x50] sm:$0xff] %vm959_vm3, %v1085_v57  ;;  %v939_v62 = vadd.f32 %v2420_v27, %v938_v61  ;;  %v1134_v63 = vmax.f32 %v1132_v58, %v1133_v59  ;;  %v1168_v61 = vld [vmem:[#allocation12 + $0x10] sm:$0xff] }
 0x1b2   :  { %v991_v0 = vld [vmem:[#allocation3 + $0x60] sm:$0xff] }
 0x1b3   :  { %v1010_v1 = vadd.f32 %v991_v0, %v772_v45  ;;  %973 = vst.msk [vmem:[#allocation3 + $0x68] sm:$0xff] %vm959_vm3, %v939_v62 }
 0x1b4   :  { %v1048_v2 = vld [vmem:[#allocation3 + $0x58] sm:$0xff]  ;;  %1135 = vst.msk [vmem:[#allocation4 + $0x20] sm:$0xff] %vm959_vm3, %v1134_v63 }
 0x1b5   :  { %v1067_v3 = vadd.f32 %v1048_v2, %v854_v47  ;;  %1029 = vst.msk [vmem:[#allocation3 + $0x60] sm:$0xff] %vm959_vm3, %v1010_v1  ;;  %v778_v4 = vpop.f32.mrf.mxu3  ;;  %v1170_v47 = vld [vmem:[#allocation12 + $0x20] sm:$0xff]  ;;  %v1167_v2 = vld [vmem:[#allocation12 + $0x8] sm:$0xff] }
 0x1b6   :  { %1327 = vmatpush.msra.mxu2 %v1170_v47  ;;  %v1586_v47 = vld [vmem:[#allocation15 + $0x1d8] sm:$0xff] }
 0x1b7   :  { %v1086_v5 = vmax.f32 %v1067_v3, 0.0  ;;  %v860_v11 = vpop.f32.mrf.mxu0 }
 0x1b8   :  { %v941_v6 = vpop.f32.mrf.mxu1  ;;  %v1136_v18 = vld [vmem:[#allocation3 + $0x50] sm:$0xff] }
 0x1b9   :  { %1105 = vst.msk [vmem:[#allocation3 + $0x58] sm:$0xff] %vm959_vm3, %v1086_v5  ;;  %v942_v9 = vadd.f32 %v2420_v27, %v941_v6 }
 0x1ba   :  { %v992_v10 = vld [vmem:[#allocation3 + $0x68] sm:$0xff] }
 0x1bb   :  { %v1011_v12 = vadd.f32 %v992_v10, %v775_v56  ;;  %974 = vst.msk [vmem:[#allocation3 + $0x70] sm:$0xff] %vm959_vm3, %v942_v9  ;;  %v2543_v13 = vld [vmem:[#allocation4 + $0x20] sm:$0xff] }
 0x1bc   :  { %v1049_v14 = vld [vmem:[#allocation3 + $0x60] sm:$0xff]  ;;  %1833 = vmatmul.msk.f32.gmra.mxu2 %vm959_vm3, %v2543_v13  ;;  %1843 = vmatmul.msk.f32.gmra.mxu3 %vm959_vm3, %v2543_v13 }
 0x1bd   :  { %v1068_v15 = vadd.f32 %v1049_v14, %v857_v60  ;;  %1030 = vst.msk [vmem:[#allocation3 + $0x68] sm:$0xff] %vm959_vm3, %v1011_v12  ;;  %v781_v16 = vpop.f32.mrf.mxu3  ;;  %v1169_v60 = vld [vmem:[#allocation12 + $0x18] sm:$0xff] }
 0x1be   :  { %1328 = vmatpush.msra.mxu2 %v1169_v60  ;;  %v1623_v60 = vld [vmem:[#allocation15 + $0x248] sm:$0xff] }
 0x1bf   :  { %v1087_v17 = vmax.f32 %v1068_v15, 0.0  ;;  %v863_v28 = vpop.f32.mrf.mxu0 }
 0x1c0   :  { %v1137_v19 = vld [vmem:[#allocation3 + $0x58] sm:$0xff]  ;;  %v944_v20 = vpop.f32.mrf.mxu1  ;;  %1329 = vmatpush.msra.mxu2 %v1168_v61  ;;  %v1488_v61 = vld [vmem:[#allocation15 + $0xd0] sm:$0xff] }
 0x1c1   :  { %1106 = vst.msk [vmem:[#allocation3 + $0x60] sm:$0xff] %vm959_vm3, %v1087_v17  ;;  %v945_v22 = vadd.f32 %v2420_v27, %v944_v20  ;;  %v1138_v23 = vmax.f32 %v1136_v18, %v1137_v19 }
 0x1c2   :  { %v993_v24 = vld [vmem:[#allocation3 + $0x70] sm:$0xff]  ;;  %1330 = vmatpush.msra.mxu2 %v1167_v2 }
 0x1c3   :  { %v1012_v25 = vadd.f32 %v993_v24, %v778_v4  ;;  %975 = vst.msk [vmem:[#allocation3 + $0x78] sm:$0xff] %vm959_vm3, %v945_v22 }
 0x1c4   :  { %v1050_v26 = vld [vmem:[#allocation3 + $0x68] sm:$0xff]  ;;  %1139 = vst.msk [vmem:[#allocation4 + $0x28] sm:$0xff] %vm959_vm3, %v1138_v23  ;;  %1331 = vmatpush.msra.mxu2 %v1166_v8  ;;  %v1482_v8 = vld [vmem:[#allocation15 + $0xa0] sm:$0xff] }
 0x1c5   :  { %v1069_v29 = vadd.f32 %v1050_v26, %v860_v11  ;;  %1031 = vst.msk [vmem:[#allocation3 + $0x70] sm:$0xff] %vm959_vm3, %v1012_v25  ;;  %v784_v31 = vpop.f32.mrf.mxu3 }
 0x1c7   :  { %v1088_v32 = vmax.f32 %v1069_v29, 0.0  ;;  %v866_v42 = vpop.f32.mrf.mxu0 }
 0x1c8   :  { %v947_v33 = vpop.f32.mrf.mxu1  ;;  %v1140_v44 = vld [vmem:[#allocation3 + $0x60] sm:$0xff] }
 0x1c9   :  { %1107 = vst.msk [vmem:[#allocation3 + $0x68] sm:$0xff] %vm959_vm3, %v1088_v32  ;;  %v948_v36 = vadd.f32 %v2420_v27, %v947_v33 }
 0x1ca   :  { %v994_v37 = vld [vmem:[#allocation3 + $0x78] sm:$0xff] }
 0x1cb   :  { %v1013_v38 = vadd.f32 %v994_v37, %v781_v16  ;;  %976 = vst.msk [vmem:[#allocation3 + $0x80] sm:$0xff] %vm959_vm3, %v948_v36  ;;  %v2558_v34 = vld [vmem:[#allocation4 + $0x28] sm:$0xff] }
 0x1cc   :  { %v1051_v39 = vld [vmem:[#allocation3 + $0x70] sm:$0xff]  ;;  %1834 = vmatmul.msk.f32.gmra.mxu2 %vm959_vm3, %v2558_v34  ;;  %1844 = vmatmul.msk.f32.gmra.mxu3 %vm959_vm3, %v2558_v34 }
 0x1cd   :  { %v1070_v40 = vadd.f32 %v1051_v39, %v863_v28  ;;  %1032 = vst.msk [vmem:[#allocation3 + $0x78] sm:$0xff] %vm959_vm3, %v1013_v38  ;;  %v787_v41 = vpop.f32.mrf.mxu3 }
 0x1cf   :  { %v1089_v43 = vmax.f32 %v1070_v40, 0.0  ;;  %v869_v58 = vpop.f32.mrf.mxu0 }
 0x1d0   :  { %v1141_v45 = vld [vmem:[#allocation3 + $0x68] sm:$0xff]  ;;  %v950_v46 = vpop.f32.mrf.mxu1 }
 0x1d1   :  { %1108 = vst.msk [vmem:[#allocation3 + $0x70] sm:$0xff] %vm959_vm3, %v1089_v43  ;;  %v951_v48 = vadd.f32 %v2420_v27, %v950_v46  ;;  %v1142_v50 = vmax.f32 %v1140_v44, %v1141_v45  ;;  %v1629_v43 = vld [vmem:[#allocation15 + $0x278] sm:$0xff]  ;;  %v1589_v44 = vld [vmem:[#allocation15 + $0x1f0] sm:$0xff]  ;;  %v1626_v46 = vld [vmem:[#allocation15 + $0x260] sm:$0xff] }
 0x1d2   :  { %v995_v51 = vld [vmem:[#allocation3 + $0x80] sm:$0xff]  ;;  %1630 = vmatpush.msra.mxu1 %v1629_v43  ;;  %v1618_v43 = vld [vmem:[#allocation15 + $0x220] sm:$0xff] }
 0x1d3   :  { %v1014_v52 = vadd.f32 %v995_v51, %v784_v31  ;;  %977 = vst.msk [vmem:[#allocation3 + $0x88] sm:$0xff] %vm959_vm3, %v951_v48  ;;  %v1628_v45 = vld [vmem:[#allocation15 + $0x270] sm:$0xff]  ;;  %v1625_v48 = vld [vmem:[#allocation15 + $0x258] sm:$0xff] }
 0x1d4   :  { %v1052_v54 = vld [vmem:[#allocation3 + $0x78] sm:$0xff]  ;;  %1143 = vst.msk [vmem:[#allocation4 + $0x30] sm:$0xff] %vm959_vm3, %v1142_v50  ;;  %1631 = vmatpush.msra.mxu1 %v1628_v45  ;;  %v1492_v50 = vld [vmem:[#allocation15 + $0xf0] sm:$0xff] }
 0x1d5   :  { %v1071_v55 = vadd.f32 %v1052_v54, %v866_v42  ;;  %1033 = vst.msk [vmem:[#allocation3 + $0x80] sm:$0xff] %vm959_vm3, %v1014_v52  ;;  %v790_v56 = vpop.f32.mrf.mxu3  ;;  %v1590_v42 = vld [vmem:[#allocation15 + $0x1f8] sm:$0xff]  ;;  %v1585_v51 = vld [vmem:[#allocation15 + $0x1d0] sm:$0xff]  ;;  %v1491_v52 = vld [vmem:[#allocation15 + $0xe8] sm:$0xff] }
 0x1d6   :  { %1591 = vmatpush.msra.mxu0 %v1590_v42  ;;  %v1624_v54 = vld [vmem:[#allocation15 + $0x250] sm:$0xff]  ;;  %v1579_v42 = vld [vmem:[#allocation15 + $0x1a0] sm:$0xff] }
 0x1d7   :  { %v1090_v57 = vmax.f32 %v1071_v55, 0.0  ;;  %v872_v15 = vpop.f32.mrf.mxu0  ;;  %v1490_v55 = vld [vmem:[#allocation15 + $0xe0] sm:$0xff] }
 0x1d8   :  { %v953_v59 = vpop.f32.mrf.mxu1  ;;  %v1144_v9 = vld [vmem:[#allocation3 + $0x70] sm:$0xff]  ;;  %1592 = vmatpush.msra.mxu0 %v1589_v44 }
 0x1d9   :  { %1109 = vst.msk [vmem:[#allocation3 + $0x78] sm:$0xff] %vm959_vm3, %v1090_v57  ;;  %v954_v62 = vadd.f32 %v2420_v27, %v953_v59  ;;  %v1489_v59 = vld [vmem:[#allocation15 + $0xd8] sm:$0xff]  ;;  %v1460_v44 = vld [vmem:[#allocation15] sm:$0xff] }
 0x1da   :  { %v996_v63 = vld [vmem:[#allocation3 + $0x88] sm:$0xff] }
 0x1db   :  { %v1015_v0 = vadd.f32 %v996_v63, %v787_v41  ;;  %978 = vst.msk [vmem:[#allocation3 + $0x90] sm:$0xff] %vm959_vm3, %v954_v62  ;;  %v2573_v1 = vld [vmem:[#allocation4 + $0x30] sm:$0xff]  ;;  %v1487_v62 = vld [vmem:[#allocation15 + $0xc8] sm:$0xff] }
 0x1dc   :  { %v1053_v3 = vld [vmem:[#allocation3 + $0x80] sm:$0xff]  ;;  %1835 = vmatmul.msk.f32.gmra.mxu2 %vm959_vm3, %v2573_v1  ;;  %1845 = vmatmul.msk.f32.gmra.mxu3 %vm959_vm3, %v2573_v1  ;;  %v1583_v63 = vld [vmem:[#allocation15 + $0x1c0] sm:$0xff] }
 0x1dd   :  { %v1072_v4 = vadd.f32 %v1053_v3, %v869_v58  ;;  %1034 = vst.msk [vmem:[#allocation3 + $0x88] sm:$0xff] %vm959_vm3, %v1015_v0  ;;  %v793_v5 = vpop.f32.mrf.mxu3  ;;  %v1584_v58 = vld [vmem:[#allocation15 + $0x1c8] sm:$0xff]  ;;  %v1622_v0 = vld [vmem:[#allocation15 + $0x240] sm:$0xff]  ;;  %v1485_v3 = vld [vmem:[#allocation15 + $0xb8] sm:$0xff] }
 0x1df   :  { %v1091_v6 = vmax.f32 %v1072_v4, 0.0  ;;  %v1484_v4 = vld [vmem:[#allocation15 + $0xb0] sm:$0xff] }
 0x1e0   :  { %v1145_v10 = vld [vmem:[#allocation3 + $0x78] sm:$0xff]  ;;  %v956_v11 = vpop.f32.mrf.mxu1 }
 0x1e1   :  { %1110 = vst.msk [vmem:[#allocation3 + $0x80] sm:$0xff] %vm959_vm3, %v1091_v6  ;;  %v957_v12 = vadd.f32 %v2420_v27, %v956_v11  ;;  %v1146_v14 = vmax.f32 %v1144_v9, %v1145_v10  ;;  %v875_v27 = vpop.f32.mrf.mxu0  ;;  %v1483_v6 = vld [vmem:[#allocation15 + $0xa8] sm:$0xff]  ;;  %v1582_v9 = vld [vmem:[#allocation15 + $0x1b8] sm:$0xff]  ;;  %v1480_v11 = vld [vmem:[#allocation15 + $0x90] sm:$0xff] }
 0x1e2   :  { %v997_v16 = vld [vmem:[#allocation3 + $0x90] sm:$0xff]  ;;  %v1481_v10 = vld [vmem:[#allocation15 + $0x98] sm:$0xff] }
 0x1e3   :  { %v1016_v17 = vadd.f32 %v997_v16, %v790_v56  ;;  %979 = vst.msk [vmem:[#allocation3 + $0x98] sm:$0xff] %vm959_vm3, %v957_v12  ;;  %v1475_v16 = vld [vmem:[#allocation15 + $0x78] sm:$0xff] }
 0x1e4   :  { %v1054_v18 = vld [vmem:[#allocation3 + $0x88] sm:$0xff]  ;;  %1147 = vst.msk [vmem:[#allocation4 + $0x38] sm:$0xff] %vm959_vm3, %v1146_v14  ;;  %v1479_v14 = vld [vmem:[#allocation15 + $0x88] sm:$0xff] }
 0x1e5   :  { %v1073_v19 = vadd.f32 %v1054_v18, %v872_v15  ;;  %1035 = vst.msk [vmem:[#allocation3 + $0x90] sm:$0xff] %vm959_vm3, %v1016_v17  ;;  %v796_v20 = vpop.f32.mrf.mxu3  ;;  %v1478_v15 = vld [vmem:[#allocation15 + $0x80] sm:$0xff]  ;;  %v1621_v17 = vld [vmem:[#allocation15 + $0x238] sm:$0xff]  ;;  %v1474_v18 = vld [vmem:[#allocation15 + $0x70] sm:$0xff] }
 0x1e6   :  { %v1473_v20 = vld [vmem:[#allocation15 + $0x68] sm:$0xff] }
 0x1e7   :  { %v1092_v21 = vmax.f32 %v1073_v19, 0.0 }
 0x1e8   :  { %v1148_v29 = vld [vmem:[#allocation3 + $0x80] sm:$0xff] }
 0x1e9   :  { %1111 = vst.msk [vmem:[#allocation3 + $0x88] sm:$0xff] %vm959_vm3, %v1092_v21  ;;  %v1472_v21 = vld [vmem:[#allocation15 + $0x60] sm:$0xff] }
 0x1ea   :  { %v998_v22 = vld [vmem:[#allocation3 + $0x98] sm:$0xff] }
 0x1eb   :  { %v1017_v23 = vadd.f32 %v998_v22, %v793_v5  ;;  %v1163_v24 = vld [vmem:[#allocation4 + $0x38] sm:$0xff]  ;;  %v1471_v22 = vld [vmem:[#allocation15 + $0x58] sm:$0xff] }
 0x1ec   :  { %v1055_v25 = vld [vmem:[#allocation3 + $0x90] sm:$0xff]  ;;  %1836 = vmatmul.msk.f32.gmra.mxu2 %vm959_vm3, %v1163_v24  ;;  %1846 = vmatmul.msk.f32.gmra.mxu3 %vm959_vm3, %v1163_v24 }
 0x1ed   :  { %v1074_v26 = vadd.f32 %v1055_v25, %v875_v27  ;;  %1036 = vst.msk [vmem:[#allocation3 + $0x98] sm:$0xff] %vm959_vm3, %v1017_v23  ;;  %v1470_v23 = vld [vmem:[#allocation15 + $0x50] sm:$0xff]  ;;  %v1469_v27 = vld [vmem:[#allocation15 + $0x48] sm:$0xff] }
 0x1ee   :  { %v1581_v25 = vld [vmem:[#allocation15 + $0x1b0] sm:$0xff] }
 0x1ef   :  { %v1093_v28 = vmax.f32 %v1074_v26, 0.0  ;;  %v1620_v26 = vld [vmem:[#allocation15 + $0x230] sm:$0xff] }
 0x1f0   :  { %v1149_v31 = vld [vmem:[#allocation3 + $0x88] sm:$0xff] }
 0x1f1   :  { %1112 = vst.msk [vmem:[#allocation3 + $0x90] sm:$0xff] %vm959_vm3, %v1093_v28  ;;  %v1150_v32 = vmax.f32 %v1148_v29, %v1149_v31  ;;  %v1468_v28 = vld [vmem:[#allocation15 + $0x40] sm:$0xff]  ;;  %v1467_v29 = vld [vmem:[#allocation15 + $0x38] sm:$0xff]  ;;  %v1466_v31 = vld [vmem:[#allocation15 + $0x30] sm:$0xff] }
 0x1f3   :  { %1151 = vst.msk [vmem:[#allocation4 + $0x40] sm:$0xff] %vm959_vm3, %v1150_v32  ;;  %v1580_v32 = vld [vmem:[#allocation15 + $0x1a8] sm:$0xff] }
 0x1f4   :  { %v1113_v33 = vld [vmem:[#allocation3 + $0x98] sm:$0xff] }
 0x1f5   :  { %v1114_v35 = vmax.f32 %v1113_v33, 0.0  ;;  %v1619_v33 = vld [vmem:[#allocation15 + $0x228] sm:$0xff] }
 0x1f7   :  { %1115 = vst.msk [vmem:[#allocation3 + $0x98] sm:$0xff] %vm959_vm3, %v1114_v35 }
 0x1f8   :  { %v1152_v37 = vld [vmem:[#allocation3 + $0x90] sm:$0xff] }
 0x1fa   :  { %v1164_v36 = vld [vmem:[#allocation4 + $0x40] sm:$0xff] }
 0x1fb   :  { %1837 = vmatmul.msk.f32.gmra.mxu2 %vm959_vm3, %v1164_v36  ;;  %1847 = vmatmul.msk.f32.gmra.mxu3 %vm959_vm3, %v1164_v36 }
 0x1fe   :  { %v1153_v38 = vld [vmem:[#allocation3 + $0x98] sm:$0xff] }
 0x1ff   :  { %v1283_v39 = vpop.f32.mrf.mxu3  ;;  %v1154_v40 = vmax.f32 %v1152_v37, %v1153_v38  ;;  %v1464_v37 = vld [vmem:[#allocation15 + $0x20] sm:$0xff]  ;;  %v1463_v38 = vld [vmem:[#allocation15 + $0x18] sm:$0xff] }
 0x200   :  { %v1462_v39 = vld [vmem:[#allocation15 + $0x10] sm:$0xff] }
 0x201   :  { %1155 = vst.msk [vmem:[#allocation4 + $0x48] sm:$0xff] %vm959_vm3, %v1154_v40 }
 0x208   :  { %v1165_v41 = vld [vmem:[#allocation4 + $0x48] sm:$0xff] }
 0x209   :  { %1838 = vmatmul.msk.f32.gmra.mxu2 %vm959_vm3, %v1165_v41  ;;  %1848 = vmatmul.msk.f32.gmra.mxu3 %vm959_vm3, %v1165_v41 }
 0x20f   :  { %v1285_v45 = vpop.f32.mrf.mxu3 }
 0x211   :  { %1849 = vmatmul.msk.f32.vlgmr.msra.gmra.mxu2 %vm959_vm3, %v2483_v49  ;;  %v1588_v49 = vld [vmem:[#allocation15 + $0x1e8] sm:$0xff] }
 0x212   :  { %1593 = vmatpush.msra.mxu0 %v1588_v49 }
 0x219   :  { %1850 = vmatmul.msk.f32.gmra.mxu2 %vm959_vm3, %v2498_v7  ;;  %v1627_v7 = vld [vmem:[#allocation15 + $0x268] sm:$0xff] }
 0x21a   :  { %1632 = vmatpush.msra.mxu1 %v1627_v7  ;;  %v1578_v7 = vld [vmem:[#allocation15 + $0x198] sm:$0xff] }
 0x21c   :  { %1633 = vmatpush.msra.mxu1 %v1626_v46 }
 0x21e   :  { %1634 = vmatpush.msra.mxu1 %v1625_v48 }
 0x220   :  { %1635 = vmatpush.msra.mxu1 %v1624_v54  ;;  %v1616_v54 = vld [vmem:[#allocation15 + $0x210] sm:$0xff] }
 0x221   :  { %1851 = vmatmul.msk.f32.gmra.mxu2 %vm959_vm3, %v2513_v30  ;;  %v1587_v30 = vld [vmem:[#allocation15 + $0x1e0] sm:$0xff] }
 0x222   :  { %1594 = vmatpush.msra.mxu0 %v1587_v30  ;;  %1636 = vmatpush.msra.mxu1 %v1623_v60  ;;  %v1288_v30 = vpop.f32.mrf.mxu3 }
 0x224   :  { %1595 = vmatpush.msra.mxu0 %v1586_v47  ;;  %1637 = vmatpush.msra.mxu1 %v1622_v0  ;;  %v2635_v47 = vld [vmem:[%s2725_s12] ss:$0 sm:$0xff] }
 0x226   :  { %1596 = vmatpush.msra.mxu0 %v1585_v51  ;;  %1638 = vmatpush.msra.mxu1 %v1621_v17  ;;  %v1549_v17 = vld [vmem:[#allocation15 + $0x168] sm:$0xff] }
 0x228   :  { %1597 = vmatpush.msra.mxu0 %v1584_v58  ;;  %1639 = vmatpush.msra.mxu1 %v1620_v26 }
 0x229   :  { %1852 = vmatmul.msk.f32.gmra.mxu2 %vm959_vm3, %v2528_v53  ;;  %v1493_v53 = vld [vmem:[#allocation15 + $0xf8] sm:$0xff] }
 0x22a   :  { %1494 = vmatpush.msra.mxu3 %v1493_v53  ;;  %1598 = vmatpush.msra.mxu0 %v1583_v63  ;;  %v1617_v53 = vld [vmem:[#allocation15 + $0x218] sm:$0xff] }
 0x22b   :  { %1640 = vmatpush.msra.mxu1 %v1619_v33  ;;  %v1543_v33 = vld [vmem:[#allocation15 + $0x138] sm:$0xff] }
 0x22c   :  { %1495 = vmatpush.msra.mxu3 %v1492_v50  ;;  %1599 = vmatpush.msra.mxu0 %v1582_v9 }
 0x22d   :  { %1641 = vmatpush.msra.mxu1 %v1618_v43  ;;  %v1541_v43 = vld [vmem:[#allocation15 + $0x128] sm:$0xff] }
 0x22e   :  { %1496 = vmatpush.msra.mxu3 %v1491_v52  ;;  %1600 = vmatpush.msra.mxu0 %v1581_v25  ;;  %v1577_v52 = vld [vmem:[#allocation15 + $0x190] sm:$0xff] }
 0x22f   :  { %1642 = vmatpush.msra.mxu1 %v1617_v53  ;;  %v1291_v50 = vpop.f32.mrf.mxu3  ;;  %v1546_v25 = vld [vmem:[#allocation15 + $0x150] sm:$0xff] }
 0x230   :  { %1497 = vmatpush.msra.mxu3 %v1490_v55  ;;  %1601 = vmatpush.msra.mxu0 %v1580_v32 }
 0x231   :  { %1853 = vmatmul.msk.f32.gmra.mxu2 %vm959_vm3, %v2543_v13  ;;  %v2611_v13 = vpop.f32.mrf.mxu2  ;;  %1643 = vmatpush.msra.mxu1 %v1616_v54  ;;  %v1666_v54 = vld [vmem:[%s2728_s15 + $0x48] sm:$0xff] }
 0x232   :  { %1498 = vmatpush.msra.mxu3 %v1489_v59  ;;  %1602 = vmatpush.msra.mxu0 %v1579_v42 }
 0x234   :  { %1499 = vmatpush.msra.mxu3 %v1488_v61  ;;  %1603 = vmatpush.msra.mxu0 %v1578_v7  ;;  %v1540_v7 = vld [vmem:[#allocation15 + $0x120] sm:$0xff] }
 0x236   :  { %1500 = vmatpush.msra.mxu3 %v1487_v62  ;;  %1604 = vmatpush.msra.mxu0 %v1577_v52  ;;  %v1538_v52 = vld [vmem:[#allocation15 + $0x110] sm:$0xff] }
 0x239   :  { %1854 = vmatmul.msk.f32.gmra.mxu2 %vm959_vm3, %v2558_v34  ;;  %v2614_v34 = vpop.f32.mrf.mxu2 }
 0x23f   :  { %v1294_v62 = vpop.f32.mrf.mxu3 }
 0x241   :  { %1855 = vmatmul.msk.f32.gmra.mxu2 %vm959_vm3, %v2573_v1  ;;  %v2617_v56 = vpop.f32.mrf.mxu2  ;;  %v1486_v1 = vld [vmem:[#allocation15 + $0xc0] sm:$0xff] }
 0x242   :  { %1501 = vmatpush.msra.mxu3 %v1486_v1 }
 0x244   :  { %1502 = vmatpush.msra.mxu3 %v1485_v3 }
 0x246   :  { %1503 = vmatpush.msra.mxu3 %v1484_v4 }
 0x248   :  { %1504 = vmatpush.msra.mxu3 %v1483_v6  ;;  %v1576_v6 = vld [vmem:[#allocation15 + $0x188] sm:$0xff] }
 0x249   :  { %1856 = vmatmul.msk.f32.gmra.mxu2 %vm959_vm3, %v1163_v24  ;;  %v2620_v57 = vpop.f32.mrf.mxu2  ;;  %1605 = vmatpush.msra.mxu0 %v1576_v6 }
 0x24a   :  { %1505 = vmatpush.msra.mxu3 %v1482_v8 }
 0x24c   :  { %1506 = vmatpush.msra.mxu3 %v1481_v10  ;;  %v1551_v10 = vld [vmem:[#allocation15 + $0x178] sm:$0xff] }
 0x24e   :  { %1507 = vmatpush.msra.mxu3 %v1480_v11  ;;  %v1615_v11 = vld [vmem:[#allocation15 + $0x208] sm:$0xff] }
 0x24f   :  { %1644 = vmatpush.msra.mxu1 %v1615_v11 }
 0x250   :  { %1508 = vmatpush.msra.mxu3 %v1479_v14  ;;  %v1575_v14 = vld [vmem:[#allocation15 + $0x180] sm:$0xff] }
 0x251   :  { %1857 = vmatmul.msk.f32.gmra.mxu2 %vm959_vm3, %v1164_v36  ;;  %v2622_v2 = vpop.f32.mrf.mxu2  ;;  %v1465_v36 = vld [vmem:[#allocation15 + $0x28] sm:$0xff]  ;;  %1606 = vmatpush.msra.mxu0 %v1575_v14 }
 0x252   :  { %1509 = vmatpush.msra.mxu3 %v1478_v15 }
 0x254   :  { %1514 = vmatpush.msrb.mxu3 %v1475_v16  ;;  %v1297_v16 = vpop.f32.mrf.mxu3 }
 0x256   :  { %1515 = vmatpush.msrb.mxu3 %v1474_v18 }
 0x258   :  { %1516 = vmatpush.msrb.mxu3 %v1473_v20  ;;  %v1548_v20 = vld [vmem:[#allocation15 + $0x160] sm:$0xff] }
 0x259   :  { %1858 = vmatmul.msk.f32.gmra.mxu2 %vm959_vm3, %v1165_v41  ;;  %v2624_v5 = vpop.f32.mrf.mxu2  ;;  %v1461_v41 = vld [vmem:[#allocation15 + $0x8] sm:$0xff] }
 0x25a   :  { %1517 = vmatpush.msrb.mxu3 %v1472_v21  ;;  %v1614_v21 = vld [vmem:[#allocation15 + $0x200] sm:$0xff] }
 0x25b   :  { %1645 = vmatpush.msra.mxu1 %v1614_v21  ;;  %v1657_v21 = vld [vmem:[%s2728_s15] sm:$0xff] }
 0x25c   :  { %1518 = vmatpush.msrb.mxu3 %v1471_v22 }
 0x25e   :  { %1519 = vmatpush.msrb.mxu3 %v1470_v23 }
 0x25f   :  { %v1300_v26 = vpop.f32.mrf.mxu3 }
 0x260   :  { %1520 = vmatpush.msrb.mxu3 %v1469_v27  ;;  %v1547_v27 = vld [vmem:[#allocation15 + $0x158] sm:$0xff] }
 0x261   :  { %v2626_v12 = vpop.f32.mrf.mxu2 }
 0x262   :  { %1521 = vmatpush.msrb.mxu3 %v1468_v28  ;;  %v1545_v28 = vld [vmem:[#allocation15 + $0x148] sm:$0xff] }
 0x264   :  { %1522 = vmatpush.msrb.mxu3 %v1467_v29  ;;  %v1544_v29 = vld [vmem:[#allocation15 + $0x140] sm:$0xff] }
 0x266   :  { %1523 = vmatpush.msrb.mxu3 %v1466_v31 }
 0x268   :  { %1524 = vmatpush.msrb.mxu3 %v1465_v36  ;;  %v1671_v36 = vld [vmem:[%s2728_s15 + $0x70] sm:$0xff] }
 0x26a   :  { %1525 = vmatpush.msrb.mxu3 %v1464_v37 }
 0x26c   :  { %1526 = vmatpush.msrb.mxu3 %v1463_v38 }
 0x26e   :  { %1527 = vmatpush.msrb.mxu3 %v1462_v39  ;;  %v1542_v39 = vld [vmem:[#allocation15 + $0x130] sm:$0xff] }
 0x26f   :  { %v2628_v19 = vpop.f32.mrf.mxu2 }
 0x270   :  { %1528 = vmatpush.msrb.mxu3 %v1461_v41  ;;  %v1303_v41 = vpop.f32.mrf.mxu3 }
 0x272   :  { %1529 = vmatpush.msrb.mxu3 %v1460_v44  ;;  %v1669_v44 = vld [vmem:[%s2728_s15 + $0x60] sm:$0xff] }
 0x27e   :  { %v2630_v24 = vpop.f32.mrf.mxu2 }
 0x28c   :  { %v1256_v35 = vpop.f32.mrf.mxu2 }
 0x28d   :  { %v1672_v35 = vld [vmem:[%s2728_s15 + $0x78] sm:$0xff] }
 0x28e   :  { %1677 = vmatpush.msrb.mxu2 %v1672_v35 }
 0x290   :  { %1678 = vmatpush.msrb.mxu2 %v1671_v36 }
 0x294   :  { %v1333_v40 = vpop.f32.mrf.mxu2 }
 0x295   :  { %v1334_v1 = vadd.f32 %v2635_v47, %v1333_v40  ;;  %v1670_v40 = vld [vmem:[%s2728_s15 + $0x68] sm:$0xff] }
 0x296   :  { %1679 = vmatpush.msrb.mxu2 %v1670_v40 }
 0x297   :  { %v1409_v15 = vadd.f32 %v1334_v1, %v1285_v45 }
 0x298   :  { %1680 = vmatpush.msrb.mxu2 %v1669_v44 }
 0x299   :  { %v1418_v18 = vmax.f32 %v1409_v15, 0.0 }
 0x29c   :  { %v1336_v49 = vpop.f32.mrf.mxu2 }
 0x29d   :  { %v1337_v58 = vadd.f32 %v2635_v47, %v1336_v49 }
 0x29f   :  { %v1382_v63 = vadd.f32 %v1337_v58, %v2611_v13 }
 0x2a1   :  { %v1410_v8 = vadd.f32 %v1382_v63, %v1288_v30  ;;  %v1668_v30 = vld [vmem:[%s2728_s15 + $0x58] sm:$0xff] }
 0x2a2   :  { %1681 = vmatpush.msrb.mxu2 %v1668_v30 }
 0x2a3   :  { %v1419_v13 = vmax.f32 %v1410_v8, 0.0 }
 0x2a4   :  { %v1339_v46 = vpop.f32.mrf.mxu2 }
 0x2a5   :  { %v1340_v48 = vadd.f32 %v2635_v47, %v1339_v46  ;;  %v1441_v23 = vmax.f32 %v1418_v18, %v1419_v13  ;;  %v1664_v13 = vld [vmem:[%s2728_s15 + $0x38] sm:$0xff]  ;;  %v1659_v18 = vld [vmem:[%s2728_s15 + $0x10] sm:$0xff] }
 0x2a7   :  { %v1383_v51 = vadd.f32 %v1340_v48, %v2614_v34  ;;  %v1539_v48 = vld [vmem:[#allocation15 + $0x118] sm:$0xff] }
 0x2a9   :  { %v1411_v60 = vadd.f32 %v1383_v51, %v1291_v50  ;;  %v1667_v50 = vld [vmem:[%s2728_s15 + $0x50] sm:$0xff] }
 0x2aa   :  { %1682 = vmatpush.msrb.mxu2 %v1667_v50 }
 0x2ab   :  { %v1420_v3 = vmax.f32 %v1411_v60, 0.0  ;;  %v1537_v60 = vld [vmem:[#allocation15 + $0x108] sm:$0xff] }
 0x2ac   :  { %v1342_v55 = vpop.f32.mrf.mxu2  ;;  %1683 = vmatpush.msrb.mxu2 %v1666_v54 }
 0x2ad   :  { %v1343_v59 = vadd.f32 %v2635_v47, %v1342_v55  ;;  %v1306_v55 = vpop.f32.mrf.mxu3 }
 0x2af   :  { %v1384_v61 = vadd.f32 %v1343_v59, %v2617_v56  ;;  %v1550_v56 = vld [vmem:[#allocation15 + $0x170] sm:$0xff] }
 0x2b1   :  { %v1412_v0 = vadd.f32 %v1384_v61, %v1294_v62 }
 0x2b3   :  { %v1421_v34 = vmax.f32 %v1412_v0, 0.0  ;;  %v1536_v0 = vld [vmem:[#allocation15 + $0x100] sm:$0xff] }
 0x2b4   :  { %v1345_v4 = vpop.f32.mrf.mxu2 }
 0x2b5   :  { %v1445_v9 = vmax.f32 %v1420_v3, %v1421_v34  ;;  %v1346_v37 = vadd.f32 %v2635_v47, %v1345_v4  ;;  %v1309_v6 = vpop.f32.mrf.mxu3 }
 0x2b7   :  { %1510 = vmatmul.f32.vlgmr.msra.gmra.mxu3 %v1445_v9  ;;  %v1385_v45 = vadd.f32 %v1346_v37, %v2620_v57  ;;  %v1871_v37 = vld [vmem:[%s2729_s16] ss:$0 sm:$0xff] }
 0x2b8   :  { %1552 = vmatpush.msra.mxu3 %v1551_v10 }
 0x2b9   :  { %v1413_v57 = vadd.f32 %v1385_v45, %v1297_v16  ;;  %v1665_v16 = vld [vmem:[%s2728_s15 + $0x40] sm:$0xff] }
 0x2ba   :  { %1553 = vmatpush.msra.mxu3 %v1550_v56  ;;  %1684 = vmatpush.msrb.mxu2 %v1665_v16 }
 0x2bb   :  { %v1422_v61 = vmax.f32 %v1413_v57, 0.0 }
 0x2bc   :  { %1554 = vmatpush.msra.mxu3 %v1549_v17  ;;  %v1348_v22 = vpop.f32.mrf.mxu2  ;;  %1685 = vmatpush.msrb.mxu2 %v1664_v13  ;;  %v1660_v17 = vld [vmem:[%s2728_s15 + $0x18] sm:$0xff] }
 0x2bd   :  { %v1349_v32 = vadd.f32 %v2635_v47, %v1348_v22 }
 0x2be   :  { %1555 = vmatpush.msra.mxu3 %v1548_v20  ;;  %v1658_v20 = vld [vmem:[%s2728_s15 + $0x8] sm:$0xff] }
 0x2bf   :  { %1530 = vmatmul.f32.vlgmr.msrb.gmra.mxu3 %v1441_v23  ;;  %v1386_v42 = vadd.f32 %v1349_v32, %v2622_v2 }
 0x2c0   :  { %1556 = vmatpush.msra.mxu3 %v1547_v27 }
 0x2c1   :  { %v1414_v2 = vadd.f32 %v1386_v42, %v1300_v26 }
 0x2c2   :  { %1557 = vmatpush.msra.mxu3 %v1546_v25 }
 0x2c3   :  { %v1423_v58 = vmax.f32 %v1414_v2, 0.0 }
 0x2c4   :  { %1558 = vmatpush.msra.mxu3 %v1545_v28  ;;  %v1351_v31 = vpop.f32.mrf.mxu2 }
 0x2c5   :  { %v1352_v38 = vadd.f32 %v2635_v47, %v1351_v31  ;;  %v1870_v31 = vld [vmem:[%s2727_s14] ss:$0 sm:$0xff] }
 0x2c6   :  { %1559 = vmatpush.msra.mxu3 %v1544_v29 }
 0x2c7   :  { %v1387_v49 = vadd.f32 %v1352_v38, %v2624_v5 }
 0x2c8   :  { %1560 = vmatpush.msra.mxu3 %v1543_v33 }
 0x2c9   :  { %v1415_v5 = vadd.f32 %v1387_v49, %v1303_v41 }
 0x2ca   :  { %1561 = vmatpush.msra.mxu3 %v1542_v39 }
 0x2cb   :  { %v1424_v62 = vmax.f32 %v1415_v5, 0.0 }
 0x2cc   :  { %1562 = vmatpush.msra.mxu3 %v1541_v43  ;;  %v1354_v46 = vpop.f32.mrf.mxu2 }
 0x2cd   :  { %v1355_v53 = vadd.f32 %v2635_v47, %v1354_v46 }
 0x2ce   :  { %1563 = vmatpush.msra.mxu3 %v1540_v7 }
 0x2cf   :  { %v1388_v51 = vadd.f32 %v1355_v53, %v2626_v12  ;;  %v1449_v12 = vmax.f32 %v1422_v61, %v1423_v58 }
 0x2d0   :  { %1564 = vmatpush.msra.mxu3 %v1539_v48 }
 0x2d1   :  { %v1416_v59 = vadd.f32 %v1388_v51, %v1306_v55 }
 0x2d2   :  { %1565 = vmatpush.msra.mxu3 %v1538_v52 }
 0x2d3   :  { %v1425_v63 = vmax.f32 %v1416_v59, 0.0 }
 0x2d4   :  { %1566 = vmatpush.msra.mxu3 %v1537_v60  ;;  %v1357_v1 = vpop.f32.mrf.mxu2 }
 0x2d5   :  { %v1453_v3 = vmax.f32 %v1424_v62, %v1425_v63  ;;  %v1358_v34 = vadd.f32 %v2635_v47, %v1357_v1 }
 0x2d6   :  { %1567 = vmatpush.msra.mxu3 %v1536_v0 }
 0x2d7   :  { %1568 = vmatmul.f32.vlgmr.msra.gmra.mxu3 %v1449_v12  ;;  %1607 = vmatmul.f32.vlgmr.msra.gmra.mxu0 %v1453_v3  ;;  %v1389_v4 = vadd.f32 %v1358_v34, %v2628_v19  ;;  %v1663_v19 = vld [vmem:[%s2728_s15 + $0x30] sm:$0xff] }
 0x2d8   :  { %1686 = vmatpush.msrb.mxu2 %v1663_v19 }
 0x2d9   :  { %v1417_v9 = vadd.f32 %v1389_v4, %v1309_v6 }
 0x2db   :  { %v1426_v14 = vmax.f32 %v1417_v9, 0.0 }
 0x2dc   :  { %v1360_v8 = vpop.f32.mrf.mxu2 }
 0x2dd   :  { %v1361_v10 = vadd.f32 %v2635_v47, %v1360_v8  ;;  %v1661_v47 = vld [vmem:[%s2728_s15 + $0x20] sm:$0xff] }
 0x2df   :  { %v1390_v11 = vadd.f32 %v1361_v10, %v2630_v24  ;;  %v1662_v24 = vld [vmem:[%s2728_s15 + $0x28] sm:$0xff] }
 0x2e0   :  { %1687 = vmatpush.msrb.mxu2 %v1662_v24 }
 0x2e1   :  { %v1437_v15 = vmax.f32 %v1390_v11, 0.0 }
 0x2e2   :  { %1688 = vmatpush.msrb.mxu2 %v1661_v47 }
 0x2e3   :  { %v1457_v56 = vmax.f32 %v1426_v14, %v1437_v15 }
 0x2e4   :  { %1689 = vmatpush.msrb.mxu2 %v1660_v17 }
 0x2e5   :  { %1646 = vmatmul.f32.vlgmr.msra.gmra.mxu1 %v1457_v56 }
 0x2e6   :  { %1690 = vmatpush.msrb.mxu2 %v1659_v18 }
 0x2e8   :  { %1691 = vmatpush.msrb.mxu2 %v1658_v20 }
 0x2ea   :  { %1692 = vmatpush.msrb.mxu2 %v1657_v21 }
 0x33a   :  { %v1511_v22 = vpop.f32.mrf.mxu3 }
 0x342   :  { %v1531_v23 = vpop.f32.mrf.mxu3 }
 0x343   :  { %v1532_v25 = vadd.f32 %v1531_v23, %v1511_v22 }
 0x354   :  { %v1608_v28 = vpop.f32.mrf.mxu0 }
 0x35a   :  { %v1569_v27 = vpop.f32.mrf.mxu3 }
 0x35b   :  { %v1572_v26 = vadd.f32 %v1569_v27, %v1532_v25 }
 0x35d   :  { %v1611_v29 = vadd.f32 %v1608_v28, %v1572_v26 }
 0x362   :  { %v1647_v32 = vpop.f32.mrf.mxu1 }
 0x363   :  { %v1650_v33 = vadd.f32 %v1647_v32, %v1611_v29 }
 0x365   :  { %v1655_v35 = vadd.f32 %v1870_v31, %v1650_v33 }
 0x367   :  { %v1656_v36 = vmax.f32 %v1655_v35, 0.0 }
 0x369   :  { %1693 = vmatmul.f32.vlgmr.msrb.gmra.mxu2 %v1656_v36 }
 0x3ec   :  { %v1694_v38 = vpop.f32.mrf.mxu2 }
 0x3ed   :  { %v1695_v39 = vadd.f32 %v1871_v37, %v1694_v38 }
 0x3ef   :  { %1697 = vst [vmem:[%s2730_s17] sm:$0xff] %v1695_v39 }
 0x3f0   :  { %1702 = vsyncpa [#allocation8], 1 }
 0x3f1   :  { %1703 = vsyncpa [#allocation10], 1 }
 0x3f2   :  { %1704 = vsyncpa [#allocation13], 1 }
 0x3f3   :  { %1705 = vsyncpa [#allocation16], 1 }

</bundles_post_ra>
